<compile_context>
chip_gen: v7x
topology: tpu7x:2x2x1
jax: 0.10.0
libtpu: 0.0.40
codegen_flags: <defaults>
</compile_context>

<pallas_src>
import functools
import math

import numpy as np

import jax
import jax.numpy as jnp
from jax.experimental import pallas as pl
from jax.experimental.pallas import tpu as pltpu


# ----------------------------- hardware-aware config -----------------------

@functools.lru_cache(maxsize=None)
def _hw():
    """Generation-dependent VMEM limit and tile targets."""
    vmem_cap = 64 << 20
    try:
        vmem_cap = int(pltpu.get_tpu_info().vmem_capacity_bytes)
    except Exception:
        pass
    if vmem_cap >= (100 << 20):     # v4 / v5e / v6e: 128 MiB physical VMEM
        return {"vmem_limit": 96 << 20, "tm": 512, "tn": 1024, "tk": 512}
    # v7x (64 MiB physical) or unknown: conservative settings that fit anywhere
    return {"vmem_limit": 40 << 20, "tm": 256, "tn": 512, "tk": 512}


def _cparams(*semantics):
    return pltpu.CompilerParams(dimension_semantics=semantics,
                                vmem_limit_bytes=_hw()["vmem_limit"])


def _pick_tile_m(m, target):
    """Row tile: multiple of 8 that divides m, <= target; split into >=2 blocks
    when possible so megacore and the BlockSpec pipeline have work to overlap."""
    if m <= 8 or m % 8 != 0:
        return m
    tm = min(target, m)
    if tm == m:
        tm = max(8, (m // 2) // 8 * 8)
    tm = max(8, (tm // 8) * 8)
    while m % tm != 0:
        tm -= 8
    return max(tm, 8)


def _pick_tile_n(n, target):
    if n % 128 != 0:
        return n                 # small / ragged N -> full (equals array dim)
    tn = max(128, (min(target, n) // 128) * 128)
    while n % tn != 0:
        tn -= 128
    return max(tn, 128)


def _pick_tile_k(k, target):
    if k % 128 != 0 or k <= target:
        return k                 # single K step
    for cand in (target, 512, 256, 128):
        if cand <= k and k % cand == 0:
            return cand
    return k


# ----------------------------- in-kernel helpers ---------------------------

def _ln_rows(x, gamma, beta, eps):
    mu = jnp.mean(x, axis=-1, keepdims=True)
    var = jnp.mean((x - mu) ** 2, axis=-1, keepdims=True)
    return (x - mu) * jax.lax.rsqrt(var + eps) * gamma + beta


def _erf_f32(x):
    # Abramowitz & Stegun 7.1.26 (|err| <= 1.5e-7); the divide goes to the EUP
    # via pl.reciprocal(approx=True) so the VALU slot is not the bottleneck.
    a1, a2, a3, a4, a5 = 0.254829592, -0.284496736, 1.421413741, -1.453152027, 1.061405429
    p = 0.3275911
    s = jnp.where(x >= 0.0, 1.0, -1.0)
    z = jnp.abs(x)
    t = pl.reciprocal(1.0 + p * z, approx=True)
    poly = ((((a5 * t + a4) * t + a3) * t + a2) * t + a1) * t
    return s * (1.0 - poly * jnp.exp(-z * z))


def _gelu_exact(x):
    return 0.5 * x * (1.0 + _erf_f32(x * (1.0 / math.sqrt(2.0))))


# ----------------------------- fused linear kernel --------------------------

def _linear_kernel(*refs, has_bias, act, has_resin, has_post_ln, has_resout,
                   single_k, eps):
    idx = 0
    x_ref = refs[idx]; idx += 1
    w_ref = refs[idx]; idx += 1
    b_ref = ri_ref = g_ref = be_ref = ro_ref = None
    if has_bias:
        b_ref = refs[idx]; idx += 1
    if has_resin:
        ri_ref = refs[idx]; idx += 1
    if has_post_ln:
        g_ref, be_ref = refs[idx], refs[idx + 1]; idx += 2
    if has_resout:
        ro_ref = refs[idx]; idx += 1
    o_ref = refs[idx]; idx += 1
    acc_ref = refs[idx]

    def epilogue(acc):
        if has_bias:
            acc = acc + b_ref[...]
        if act == "gelu":
            acc = _gelu_exact(acc)
        if has_resin:
            acc = ri_ref[...].astype(jnp.float32) + acc
        if has_post_ln:
            acc = _ln_rows(acc, g_ref[...], be_ref[...], eps)
        if has_resout:
            acc = ro_ref[...].astype(jnp.float32) + acc
        o_ref[...] = acc.astype(o_ref.dtype)

    # bf16 MXU operands, f32 accumulation.
    x = x_ref[...].astype(jnp.bfloat16)
    w = w_ref[...].astype(jnp.bfloat16)
    part = jnp.dot(x, w, preferred_element_type=jnp.float32)

    if single_k:
        epilogue(part)
    else:
        k = pl.program_id(2)

        @pl.when(k == 0)
        def _():
            acc_ref[...] = jnp.zeros_like(acc_ref)

        acc_ref[...] += part

        @pl.when(k == pl.num_programs(2) - 1)
        def _():
            epilogue(acc_ref[...])


def fused_linear(x, w, *, bias=None, act=None, residual_in=None,
                 post_ln=None, residual_out=None, eps=1e-5):
    """y = [resout +] [LN_post(] [resin +] act(x @ W [+ b]) [)]."""
    M, K = x.shape
    Kw, N = w.shape
    assert K == Kw
    hw = _hw()
    tm = _pick_tile_m(M, hw["tm"])
    tn = N if post_ln is not None else _pick_tile_n(N, hw["tn"])  # LN needs full rows
    tk = _pick_tile_k(K, hw["tk"])
    gm, gn, gk = M // tm, N // tn, K // tk
    single_k = gk == 1

    in_specs = [pl.BlockSpec((tm, tk), lambda i, j, k: (i, k)),
                pl.BlockSpec((tk, tn), lambda i, j, k: (k, j))]
    operands = [x, w]
    if bias is not None:
        in_specs.append(pl.BlockSpec((1, tn), lambda i, j, k: (0, j)))
        operands.append(bias.reshape(1, N).astype(jnp.float32))
    if residual_in is not None:
        in_specs.append(pl.BlockSpec((tm, tn), lambda i, j, k: (i, j)))
        operands.append(residual_in)
    if post_ln is not None:
        g, b = post_ln
        in_specs += [pl.BlockSpec((1, N), lambda i, j, k: (0, 0)),
                     pl.BlockSpec((1, N), lambda i, j, k: (0, 0))]
        operands += [g.reshape(1, N), b.reshape(1, N)]
    if residual_out is not None:
        in_specs.append(pl.BlockSpec((tm, tn), lambda i, j, k: (i, j)))
        operands.append(residual_out)

    kernel = functools.partial(
        _linear_kernel, has_bias=bias is not None, act=act,
        has_resin=residual_in is not None, has_post_ln=post_ln is not None,
        has_resout=residual_out is not None, single_k=single_k, eps=eps)

    return pl.pallas_call(
        kernel,
        out_shape=jax.ShapeDtypeStruct((M, N), jnp.float32),
        grid=(gm, gn, gk),
        in_specs=in_specs,
        out_specs=pl.BlockSpec((tm, tn), lambda i, j, k: (i, j)),
        scratch_shapes=[pltpu.VMEM((tm, tn), jnp.float32)],
        compiler_params=_cparams("parallel", "parallel", "arbitrary"),
    )(*operands)


# ----------------------------- layernorm kernel -----------------------------

def _layernorm_kernel(x_ref, g_ref, b_ref, o_ref, *, eps):
    x = x_ref[...].astype(jnp.float32)
    o_ref[...] = _ln_rows(x, g_ref[...], b_ref[...], eps).astype(o_ref.dtype)


def layernorm(x2d, gamma, beta, eps=1e-5):
    M, D = x2d.shape
    tm = _pick_tile_m(M, _hw()["tm"])
    return pl.pallas_call(
        functools.partial(_layernorm_kernel, eps=eps),
        out_shape=jax.ShapeDtypeStruct((M, D), jnp.float32),
        grid=(M // tm,),
        in_specs=[pl.BlockSpec((tm, D), lambda i: (i, 0)),
                  pl.BlockSpec((1, D), lambda i: (0, 0)),
                  pl.BlockSpec((1, D), lambda i: (0, 0))],
        out_specs=pl.BlockSpec((tm, D), lambda i: (i, 0)),
        compiler_params=_cparams("parallel"),
    )(x2d, gamma.reshape(1, D), beta.reshape(1, D))


# ----------------------------- attention kernels ----------------------------

def _rec_attn_kernel(qkv_ref, qps_ref, pos_ref, bias_ref, u_ref, o_ref, *,
                     num_heads, d_head, scale):
    """Fused relative attention for one batch element (heads looped inside).
    Softmax is over the *query* axis (axis 0), matching the reference dim=1.
    k/v are sliced from the unsplit qkv block; the content and positional
    score dots are fused into a single K=2*d_head MXU push per head."""
    HD = num_heads * d_head
    qkv = qkv_ref[0].astype(jnp.float32)                    # (S, 3*HD)
    u = u_ref[...].astype(jnp.float32)                      # (1, HD)
    # scale folded into q (O(S*HD) instead of scaling the score matrix).
    qc = ((qkv[:, :HD] + u) * scale).astype(jnp.bfloat16)
    qp = (qps_ref[0].astype(jnp.float32) * scale).astype(jnp.bfloat16)
    k = qkv[:, HD:2 * HD].astype(jnp.bfloat16)
    v = qkv[:, 2 * HD:].astype(jnp.bfloat16)
    pos = pos_ref[...].astype(jnp.bfloat16)                 # (J, HD)
    bias = bias_ref[0].astype(jnp.float32)                  # (S, 1) -inf pad rows

    for h in range(num_heads):                              # static unrolled
        sl = slice(h * d_head, (h + 1) * d_head)
        q2 = jnp.concatenate([qc[:, sl], qp[:, sl]], axis=-1)   # (S, 2*dh)
        k2 = jnp.concatenate([k[:, sl], pos[:, sl]], axis=-1)   # (J, 2*dh)
        s = jax.lax.dot_general(q2, k2, (((1,), (1,)), ((), ())),
                                preferred_element_type=jnp.float32)  # (S, J)
        s = s + bias
        m = jnp.max(s, axis=0, keepdims=True)               # over query axis
        e = jnp.exp(s - m)
        p = e * pl.reciprocal(jnp.sum(e, axis=0, keepdims=True), approx=True)
        ctx = jnp.dot(p.astype(jnp.bfloat16), v[:, sl],
                      preferred_element_type=jnp.float32)   # (S, dh)
        o_ref[0, :, h * d_head:(h + 1) * d_head] = ctx.astype(o_ref.dtype)


def rec_attention(qkv, q_p_shift, pos, pad_bias, u_row, num_heads, d_head):
    B, S, HD3 = qkv.shape
    HD = num_heads * d_head
    J = pos.shape[0]
    kernel = functools.partial(_rec_attn_kernel, num_heads=num_heads,
                               d_head=d_head, scale=1.0 / math.sqrt(d_head))
    return pl.pallas_call(
        kernel,
        out_shape=jax.ShapeDtypeStruct((B, S, HD), jnp.float32),
        grid=(B,),
        in_specs=[pl.BlockSpec((1, S, HD3), lambda b: (b, 0, 0)),
                  pl.BlockSpec((1, S, HD), lambda b: (b, 0, 0)),
                  pl.BlockSpec((J, HD), lambda b: (0, 0)),
                  pl.BlockSpec((1, S, 1), lambda b: (b, 0, 0)),
                  pl.BlockSpec((1, HD), lambda b: (0, 0))],
        out_specs=pl.BlockSpec((1, S, HD), lambda b: (b, 0, 0)),
        compiler_params=_cparams("parallel"),
    )(qkv, q_p_shift, pos, pad_bias, u_row)


def _cross_attn_kernel(q_ref, kv_ref, o_ref, *, num_heads, d_head, scale):
    HD = num_heads * d_head
    q = (q_ref[0].astype(jnp.float32) * scale).astype(jnp.bfloat16)   # (I, HD)
    kv = kv_ref[0].astype(jnp.float32)                                 # (J, 2*HD)
    k = kv[:, :HD].astype(jnp.bfloat16)
    v = kv[:, HD:].astype(jnp.bfloat16)
    for h in range(num_heads):
        sl = slice(h * d_head, (h + 1) * d_head)
        s = jax.lax.dot_general(q[:, sl], k[:, sl], (((1,), (1,)), ((), ())),
                                preferred_element_type=jnp.float32)    # (I, J)
        m = jnp.max(s, axis=0, keepdims=True)
        e = jnp.exp(s - m)
        p = e * pl.reciprocal(jnp.sum(e, axis=0, keepdims=True), approx=True)
        ctx = jnp.dot(p.astype(jnp.bfloat16), v[:, sl],
                      preferred_element_type=jnp.float32)
        o_ref[0, :, h * d_head:(h + 1) * d_head] = ctx.astype(o_ref.dtype)


def cross_attention_ctx(q, kv, num_heads, d_head):
    B, I, HD = q.shape
    J = kv.shape[1]
    kernel = functools.partial(_cross_attn_kernel, num_heads=num_heads,
                               d_head=d_head, scale=1.0 / math.sqrt(d_head))
    return pl.pallas_call(
        kernel,
        out_shape=jax.ShapeDtypeStruct((B, I, HD), jnp.float32),
        grid=(B,),
        in_specs=[pl.BlockSpec((1, I, HD), lambda b: (b, 0, 0)),
                  pl.BlockSpec((1, J, 2 * HD), lambda b: (b, 0, 0))],
        out_specs=pl.BlockSpec((1, I, HD), lambda b: (b, 0, 0)),
        compiler_params=_cparams("parallel"),
    )(q, kv)


# ----------------------------- model (JAX glue around kernels) -------------

def decoder_layer(x, enc, pos_emb, u, vb, lp, pad_bias, src_row, valid,
                  n_heads, d_head):
    B, S, dm = x.shape
    d_in = n_heads * d_head
    xf = x.reshape(B * S, dm)

    # --- recurrence (relative) attention sublayer, pre-norm ---
    n1 = layernorm(xf, lp["ln1_g"], lp["ln1_b"])
    qkv = fused_linear(n1, lp["rec"]["qkv_w"])                   # (B*S, 3*d_in)
    q = qkv[:, :d_in]
    q_p = q + vb.reshape(1, d_in)
    # exact _rel_shift: static cross-batch row permutation applied to q_p
    # (positional scores are linear in q_p, so this is exactly equivalent,
    # including the cross-batch mixing of the torch .view).
    q_p_shift = jnp.where(valid, q_p[src_row], 0.0).reshape(B, S, d_in)
    ctx = rec_attention(qkv.reshape(B, S, 3 * d_in), q_p_shift, pos_emb,
                        pad_bias, u.reshape(1, d_in), n_heads, d_head)
    # fc + inner residual (normed x) + post-LN + outer residual x, all fused
    out = fused_linear(ctx.reshape(B * S, d_in), lp["rec"]["fc_w"],
                       bias=lp["rec"]["fc_b"], residual_in=n1,
                       post_ln=(lp["rec"]["ln_g"], lp["rec"]["ln_b"]),
                       residual_out=xf)
    outf = out

    # --- cross attention sublayer, pre-norm ---
    n2 = layernorm(outf, lp["ln2_g"], lp["ln2_b"])
    qx = fused_linear(n2, lp["cross"]["q_w"])
    J = enc.shape[1]
    kvx = fused_linear(enc.reshape(B * J, enc.shape[2]), lp["cross"]["kv_w"])
    ctx2 = cross_attention_ctx(qx.reshape(B, S, d_in),
                               kvx.reshape(B, J, 2 * d_in), n_heads, d_head)
    out2 = fused_linear(ctx2.reshape(B * S, d_in), lp["cross"]["fc_w"],
                        bias=lp["cross"]["fc_b"], residual_in=n2,
                        post_ln=(lp["cross"]["ln_g"], lp["cross"]["ln_b"]),
                        residual_out=outf)
    out2f = out2

    # --- FFN sublayer, pre-norm: LN3 hoisted to the standalone LN kernel so an
    #     N-tiled w1 matmul never recomputes LN per column tile ---
    n3 = layernorm(out2f, lp["ln3_g"], lp["ln3_b"])
    h = fused_linear(n3, lp["ffn"]["w1"], bias=lp["ffn"]["b1"], act="gelu")
    out3 = fused_linear(h, lp["ffn"]["w2"], bias=lp["ffn"]["b2"],
                        residual_out=out2f)
    return out3.reshape(B, S, dm)


def transformer_xl_forward(params, tokens, enc_output, *, n_heads, d_head,
                           d_model, d_inner, vocab, pad_id, out_idx=-1):
    B, S = tokens.shape
    prev = 0  # mem=None
    J = S + prev

    # tgt_mask in the reference is triu over trailing dims (S+prev, 1) with
    # k=1+prev -> identically False, so it is dropped entirely.
    # pad mask over the *query* axis, as an additive -inf bias (added in-kernel).
    pad_bias = jnp.where(tokens == pad_id, -jnp.inf, 0.0).astype(jnp.float32)
    pad_bias = pad_bias.reshape(B, S, 1)

    # TODO(synk): embedding gather + sinusoid table stay in XLA glue (no clean
    # single-kernel Pallas gather); everything downstream runs in Pallas.
    word_emb = params["emb"][tokens] * (d_model ** 0.5)

    pos_idxs = jnp.arange(J - 1, -1, -1, dtype=jnp.float32)
    inv_freq = 1.0 / (10000.0 ** (jnp.arange(0.0, d_inner, 2.0) / d_inner))
    sinusoid = pos_idxs[:, None] * inv_freq[None, :]
    pos_emb = jnp.concatenate([jnp.sin(sinusoid), jnp.cos(sinusoid)], axis=-1)

    # static rel-shift row-permutation map (trace-time constants, numpy)
    r = np.arange(B * S)
    uu = B + r
    src_b = uu // (S + 1)
    src_ip = uu % (S + 1)
    valid_np = src_ip >= 1
    src_row_np = np.where(valid_np, src_b * S + (src_ip - 1), 0)
    src_row = jnp.asarray(src_row_np, jnp.int32)
    valid = jnp.asarray(valid_np)[:, None]

    out = word_emb
    new_mem = [word_emb]
    for i, lp in enumerate(params["layers"]):
        out = decoder_layer(out, enc_output, pos_emb, params["u"][i],
                            params["v"][i], lp, pad_bias, src_row, valid,
                            n_heads, d_head)
        new_mem.append(out)

    last = out[:, out_idx]                                         # (B, d_model)
    # tied output head: logits = last @ emb.T + bias, using a pre-transposed
    # bf16 (d_model, vocab_padded) copy so every tile is a straight MXU feed;
    # vocab is padded to 128 lanes at init, padding sliced off here.
    logits_p = fused_linear(last, params["emb_t"], bias=params["fc_out_b"])
    logits = logits_p[:, :vocab]
    return logits, new_mem


# ----------------------------- parameter init ------------------------------

def init_params(key, vocab, n_layers, n_heads, d_model, d_inner, dff):
    keys = iter(jax.random.split(key, 256))

    def nrm(shape, scale=0.02):
        return jax.random.normal(next(keys), shape, jnp.float32) * scale

    d_head = d_inner // n_heads
    vocab_p = ((vocab + 127) // 128) * 128
    emb = jnp.pad(nrm((vocab, d_model)), ((0, vocab_p - vocab), (0, 0)))
    fc_out_b = jnp.pad(nrm((vocab,)), (0, vocab_p - vocab))
    p = {
        "emb": emb,                                  # f32, for the gather
        "emb_t": emb.T.astype(jnp.bfloat16),         # tied head weight (pre-T)
        "u": nrm((n_layers, n_heads, d_head)),
        "v": nrm((n_layers, n_heads, d_head)),
        "fc_out_b": fc_out_b,
        "layers": [],
    }
    for _ in range(n_layers):
        q_w = nrm((d_model, d_inner))
        kv_w = nrm((d_model, 2 * d_inner))
        lp = {
            "rec": {
                # q and kv projections fused into one matmul weight
                "qkv_w": jnp.concatenate([q_w, kv_w], axis=1).astype(jnp.bfloat16),
                "fc_w": nrm((d_inner, d_model)).astype(jnp.bfloat16),
                "fc_b": nrm((d_model,)),
                "ln_g": jnp.ones((d_model,), jnp.float32),
                "ln_b": jnp.zeros((d_model,), jnp.float32),
            },
            "cross": {
                "q_w": nrm((d_model, d_inner)).astype(jnp.bfloat16),
                "kv_w": nrm((d_model, 2 * d_inner)).astype(jnp.bfloat16),
                "fc_w": nrm((d_inner, d_model)).astype(jnp.bfloat16),
                "fc_b": nrm((d_model,)),
                "ln_g": jnp.ones((d_model,), jnp.float32),
                "ln_b": jnp.zeros((d_model,), jnp.float32),
            },
            "ffn": {
                "w1": nrm((d_model, dff)).astype(jnp.bfloat16),
                "b1": nrm((dff,)),
                "w2": nrm((dff, d_model)).astype(jnp.bfloat16),
                "b2": nrm((d_model,)),
            },
            "ln1_g": jnp.ones((d_model,), jnp.float32),
            "ln1_b": jnp.zeros((d_model,), jnp.float32),
            "ln2_g": jnp.ones((d_model,), jnp.float32),
            "ln2_b": jnp.zeros((d_model,), jnp.float32),
            "ln3_g": jnp.ones((d_model,), jnp.float32),
            "ln3_b": jnp.zeros((d_model,), jnp.float32),
        }
        p["layers"].append(lp)
    return p


# ----------------------------- main ----------------------------------------

if __name__ == "__main__":
    VOCAB, N_LAYERS, N_HEADS = 50, 2, 2
    D_MODEL, D_INNER, DFF, SEQ = 32, 32, 64, 8
    BATCH, ENC_LEN = 2, 8
    PAD_ID = 0

    key = jax.random.PRNGKey(0)
    kp, kx, ke = jax.random.split(key, 3)

    params = init_params(kp, VOCAB, N_LAYERS, N_HEADS, D_MODEL, D_INNER, DFF)
    # token ids in [1, VOCAB) so no positions are pad (the reference's
    # softmax-over-query NaNs if an entire query column is masked).
    tokens = jax.random.randint(kx, (BATCH, SEQ), 1, VOCAB, dtype=jnp.int32)
    enc_output = jax.random.normal(ke, (BATCH, ENC_LEN, D_MODEL), jnp.float32)

    fwd = jax.jit(functools.partial(
        transformer_xl_forward,
        n_heads=N_HEADS, d_head=D_INNER // N_HEADS,
        d_model=D_MODEL, d_inner=D_INNER, vocab=VOCAB, pad_id=PAD_ID))

    logits, new_mem = fwd(params, tokens, enc_output)
    jax.block_until_ready(logits)

    assert logits.shape == (BATCH, VOCAB)
    assert len(new_mem) == N_LAYERS + 1
    assert not bool(jnp.any(jnp.isnan(logits)))
    print("KERNEL_OK")
</pallas_src>

<mosaic_0001>
module attributes {stable_mosaic.version = 11 : i64} {
  func.func @_linear_kernel(%arg0: i32, %arg1: i32, %arg2: i32, %arg3: memref<8x32xf32, #tpu.memory_space<vmem>>, %arg4: memref<32x96xbf16, #tpu.memory_space<vmem>>, %arg5: memref<8x96xf32, #tpu.memory_space<vmem>>, %arg6: memref<8x96xf32, #tpu.memory_space<vmem>>) attributes {dimension_semantics = [#tpu.dimension_semantics<parallel>, #tpu.dimension_semantics<parallel>, #tpu.dimension_semantics<arbitrary>], iteration_bounds = array<i64: 2, 1, 1>, scalar_prefetch = 0 : i64, scratch_operands = 1 : i64, tpu.core_type = #tpu.core_type<tc>, window_params = [{transform_indices = @transform_0, window_bounds = array<i64: 8, 32>}, {transform_indices = @transform_1, window_bounds = array<i64: 32, 96>}, {transform_indices = @transform_2, window_bounds = array<i64: 8, 96>}]} {
    %c0 = arith.constant 0 : index
    %c0_0 = arith.constant 0 : index
    %0 = vector.load %arg3[%c0, %c0_0] : memref<8x32xf32, #tpu.memory_space<vmem>>, vector<8x32xf32>
    %1 = arith.truncf %0 : vector<8x32xf32> to vector<8x32xbf16>
    %c0_1 = arith.constant 0 : index
    %c0_2 = arith.constant 0 : index
    %2 = vector.load %arg4[%c0_1, %c0_2] : memref<32x96xbf16, #tpu.memory_space<vmem>>, vector<32x96xbf16>
    %cst = arith.constant dense<0.000000e+00> : vector<8x96xf32>
    %3 = tpu.matmul %1, %2, %cst {dimension_numbers = #tpu.dot_dimension_numbers<[1], [0], [0], [1], [0, 0, 1, 1], [], []>} : vector<8x32xbf16>, vector<32x96xbf16>, vector<8x96xf32> -> vector<8x96xf32>
    %c0_3 = arith.constant 0 : index
    %c0_4 = arith.constant 0 : index
    %4 = vector.load %arg5[%c0_3, %c0_4] : memref<8x96xf32, #tpu.memory_space<vmem>>, vector<8x96xf32>
    tpu.vector_store %arg5[%c0_3, %c0_4], %3 {strides = array<i32>} : memref<8x96xf32, #tpu.memory_space<vmem>>, vector<8x96xf32>,
    return
  }
  func.func @transform_0(%arg0: i32, %arg1: i32, %arg2: i32) -> (i32, i32) {
    %c0_i32 = arith.constant 0 : i32
    return %arg0, %arg2 : i32, i32
  }
  func.func @transform_1(%arg0: i32, %arg1: i32, %arg2: i32) -> (i32, i32) {
    %c0_i32 = arith.constant 0 : i32
    return %arg2, %arg1 : i32, i32
  }
  func.func @transform_2(%arg0: i32, %arg1: i32, %arg2: i32) -> (i32, i32) {
    %c0_i32 = arith.constant 0 : i32
    return %arg0, %arg1 : i32, i32
  }
}

module attributes {stable_mosaic.version = 11 : i64} {
  func.func @_layernorm_kernel(%arg0: i32, %arg1: memref<8x32xf32, #tpu.memory_space<vmem>>, %arg2: memref<1x32xf32, #tpu.memory_space<vmem>>, %arg3: memref<1x32xf32, #tpu.memory_space<vmem>>, %arg4: memref<8x32xf32, #tpu.memory_space<vmem>>) attributes {dimension_semantics = [#tpu.dimension_semantics<parallel>], iteration_bounds = array<i64: 2>, scalar_prefetch = 0 : i64, scratch_operands = 0 : i64, tpu.core_type = #tpu.core_type<tc>, window_params = [{transform_indices = @transform_0, window_bounds = array<i64: 8, 32>}, {pipeline_mode = #tpu.pipeline_mode<synchronous>, transform_indices = @transform_1, window_bounds = array<i64: 1, 32>}, {pipeline_mode = #tpu.pipeline_mode<synchronous>, transform_indices = @transform_2, window_bounds = array<i64: 1, 32>}, {transform_indices = @transform_3, window_bounds = array<i64: 8, 32>}]} {
    %c0 = arith.constant 0 : index
    %c0_0 = arith.constant 0 : index
    %0 = vector.load %arg1[%c0, %c0_0] : memref<8x32xf32, #tpu.memory_space<vmem>>, vector<8x32xf32>
    %c0_1 = arith.constant 0 : index
    %c0_2 = arith.constant 0 : index
    %1 = vector.load %arg2[%c0_1, %c0_2] : memref<1x32xf32, #tpu.memory_space<vmem>>, vector<1x32xf32>
    %c0_3 = arith.constant 0 : index
    %c0_4 = arith.constant 0 : index
    %2 = vector.load %arg3[%c0_3, %c0_4] : memref<1x32xf32, #tpu.memory_space<vmem>>, vector<1x32xf32>
    %cst = arith.constant dense<0.000000e+00> : vector<8xf32>
    %3 = vector.multi_reduction <add>, %0, %cst [1] : vector<8x32xf32> to vector<8xf32>
    %4 = vector.shape_cast %3 : vector<8xf32> to vector<8x1xf32>
    %cst_5 = arith.constant 3.200000e+01 : f32
    %5 = vector.broadcast %cst_5 : f32 to vector<8x1xf32>
    %6 = arith.divf %4, %5 : vector<8x1xf32>
    %7 = vector.broadcast %6 : vector<8x1xf32> to vector<8x32xf32>
    %8 = arith.subf %0, %7 : vector<8x32xf32>
    %9 = arith.mulf %8, %8 : vector<8x32xf32>
    %cst_6 = arith.constant dense<0.000000e+00> : vector<8xf32>
    %10 = vector.multi_reduction <add>, %9, %cst_6 [1] : vector<8x32xf32> to vector<8xf32>
    %11 = vector.shape_cast %10 : vector<8xf32> to vector<8x1xf32>
    %cst_7 = arith.constant 3.200000e+01 : f32
    %12 = vector.broadcast %cst_7 : f32 to vector<8x1xf32>
    %13 = arith.divf %11, %12 : vector<8x1xf32>
    %14 = vector.broadcast %6 : vector<8x1xf32> to vector<8x32xf32>
    %15 = arith.subf %0, %14 : vector<8x32xf32>
    %cst_8 = arith.constant 9.99999974E-6 : f32
    %16 = vector.broadcast %cst_8 : f32 to vector<8x1xf32>
    %17 = arith.addf %13, %16 : vector<8x1xf32>
    %18 = math.rsqrt %17 : vector<8x1xf32>
    %19 = vector.broadcast %18 : vector<8x1xf32> to vector<8x32xf32>
    %20 = arith.mulf %15, %19 : vector<8x32xf32>
    %21 = vector.broadcast %1 : vector<1x32xf32> to vector<8x32xf32>
    %22 = arith.mulf %20, %21 : vector<8x32xf32>
    %23 = vector.broadcast %2 : vector<1x32xf32> to vector<8x32xf32>
    %24 = arith.addf %22, %23 : vector<8x32xf32>
    %c0_9 = arith.constant 0 : index
    %c0_10 = arith.constant 0 : index
    %25 = vector.load %arg4[%c0_9, %c0_10] : memref<8x32xf32, #tpu.memory_space<vmem>>, vector<8x32xf32>
    tpu.vector_store %arg4[%c0_9, %c0_10], %24 {strides = array<i32>} : memref<8x32xf32, #tpu.memory_space<vmem>>, vector<8x32xf32>,
    return
  }
  func.func @transform_0(%arg0: i32) -> (i32, i32) {
    %c0_i32 = arith.constant 0 : i32
    %c0_i32_0 = arith.constant 0 : i32
    return %arg0, %c0_i32 : i32, i32
  }
  func.func @transform_1(%arg0: i32) -> (i32, i32) {
    %c0_i32 = arith.constant 0 : i32
    %c0_i32_0 = arith.constant 0 : i32
    %c0_i32_1 = arith.constant 0 : i32
    return %c0_i32, %c0_i32_0 : i32, i32
  }
  func.func @transform_2(%arg0: i32) -> (i32, i32) {
    %c0_i32 = arith.constant 0 : i32
    %c0_i32_0 = arith.constant 0 : i32
    %c0_i32_1 = arith.constant 0 : i32
    return %c0_i32, %c0_i32_0 : i32, i32
  }
  func.func @transform_3(%arg0: i32) -> (i32, i32) {
    %c0_i32 = arith.constant 0 : i32
    %c0_i32_0 = arith.constant 0 : i32
    return %arg0, %c0_i32 : i32, i32
  }
}

module attributes {stable_mosaic.version = 11 : i64} {
  func.func @_rec_attn_kernel(%arg0: i32, %arg1: memref<1x8x96xf32, #tpu.memory_space<vmem>>, %arg2: memref<1x8x32xf32, #tpu.memory_space<vmem>>, %arg3: memref<8x32xf32, #tpu.memory_space<vmem>>, %arg4: memref<1x8x1xf32, #tpu.memory_space<vmem>>, %arg5: memref<1x32xf32, #tpu.memory_space<vmem>>, %arg6: memref<1x8x32xf32, #tpu.memory_space<vmem>>) attributes {dimension_semantics = [#tpu.dimension_semantics<parallel>], iteration_bounds = array<i64: 2>, scalar_prefetch = 0 : i64, scratch_operands = 0 : i64, tpu.core_type = #tpu.core_type<tc>, window_params = [{transform_indices = @transform_0, window_bounds = array<i64: 1, 8, 96>}, {transform_indices = @transform_1, window_bounds = array<i64: 1, 8, 32>}, {pipeline_mode = #tpu.pipeline_mode<synchronous>, transform_indices = @transform_2, window_bounds = array<i64: 8, 32>}, {transform_indices = @transform_3, window_bounds = array<i64: 1, 8, 1>}, {pipeline_mode = #tpu.pipeline_mode<synchronous>, transform_indices = @transform_4, window_bounds = array<i64: 1, 32>}, {transform_indices = @transform_5, window_bounds = array<i64: 1, 8, 32>}]} {
    %c0 = arith.constant 0 : index
    %c0_0 = arith.constant 0 : index
    %c0_1 = arith.constant 0 : index
    %0 = vector.load %arg1[%c0, %c0_0, %c0_1] : memref<1x8x96xf32, #tpu.memory_space<vmem>>, vector<1x8x96xf32>
    %1 = vector.shape_cast %0 : vector<1x8x96xf32> to vector<8x96xf32>
    %c0_2 = arith.constant 0 : index
    %c0_3 = arith.constant 0 : index
    %2 = vector.load %arg5[%c0_2, %c0_3] : memref<1x32xf32, #tpu.memory_space<vmem>>, vector<1x32xf32>
    %3 = vector.extract_strided_slice %1 {offsets = [0, 0], sizes = [8, 32], strides = [1, 1]} : vector<8x96xf32> to vector<8x32xf32>
    %4 = vector.broadcast %2 : vector<1x32xf32> to vector<8x32xf32>
    %5 = arith.addf %3, %4 : vector<8x32xf32>
    %cst = arith.constant 2.500000e-01 : f32
    %6 = vector.broadcast %cst : f32 to vector<8x32xf32>
    %7 = arith.mulf %5, %6 : vector<8x32xf32>
    %8 = arith.truncf %7 : vector<8x32xf32> to vector<8x32xbf16>
    %c0_4 = arith.constant 0 : index
    %c0_5 = arith.constant 0 : index
    %c0_6 = arith.constant 0 : index
    %9 = vector.load %arg2[%c0_4, %c0_5, %c0_6] : memref<1x8x32xf32, #tpu.memory_space<vmem>>, vector<1x8x32xf32>
    %10 = vector.shape_cast %9 : vector<1x8x32xf32> to vector<8x32xf32>
    %cst_7 = arith.constant 2.500000e-01 : f32
    %11 = vector.broadcast %cst_7 : f32 to vector<8x32xf32>
    %12 = arith.mulf %10, %11 : vector<8x32xf32>
    %13 = arith.truncf %12 : vector<8x32xf32> to vector<8x32xbf16>
    %14 = vector.extract_strided_slice %1 {offsets = [0, 32], sizes = [8, 32], strides = [1, 1]} : vector<8x96xf32> to vector<8x32xf32>
    %15 = arith.truncf %14 : vector<8x32xf32> to vector<8x32xbf16>
    %16 = vector.extract_strided_slice %1 {offsets = [0, 64], sizes = [8, 32], strides = [1, 1]} : vector<8x96xf32> to vector<8x32xf32>
    %17 = arith.truncf %16 : vector<8x32xf32> to vector<8x32xbf16>
    %c0_8 = arith.constant 0 : index
    %c0_9 = arith.constant 0 : index
    %18 = vector.load %arg3[%c0_8, %c0_9] : memref<8x32xf32, #tpu.memory_space<vmem>>, vector<8x32xf32>
    %19 = arith.truncf %18 : vector<8x32xf32> to vector<8x32xbf16>
    %c0_10 = arith.constant 0 : index
    %c0_11 = arith.constant 0 : index
    %c0_12 = arith.constant 0 : index
    %20 = vector.load %arg4[%c0_10, %c0_11, %c0_12] : memref<1x8x1xf32, #tpu.memory_space<vmem>>, vector<1x8x1xf32>
    %21 = vector.shape_cast %20 : vector<1x8x1xf32> to vector<8x1xf32>
    %22 = vector.extract_strided_slice %8 {offsets = [0, 0], sizes = [8, 16], strides = [1, 1]} : vector<8x32xbf16> to vector<8x16xbf16>
    %23 = vector.extract_strided_slice %13 {offsets = [0, 0], sizes = [8, 16], strides = [1, 1]} : vector<8x32xbf16> to vector<8x16xbf16>
    %24 = tpu.concatenate %22, %23 in 1 : vector<8x16xbf16>, vector<8x16xbf16> -> vector<8x32xbf16>
    %25 = vector.extract_strided_slice %15 {offsets = [0, 0], sizes = [8, 16], strides = [1, 1]} : vector<8x32xbf16> to vector<8x16xbf16>
    %26 = vector.extract_strided_slice %19 {offsets = [0, 0], sizes = [8, 16], strides = [1, 1]} : vector<8x32xbf16> to vector<8x16xbf16>
    %27 = tpu.concatenate %25, %26 in 1 : vector<8x16xbf16>, vector<8x16xbf16> -> vector<8x32xbf16>
    %cst_13 = arith.constant dense<0.000000e+00> : vector<8x8xf32>
    %28 = tpu.matmul %24, %27, %cst_13 {dimension_numbers = #tpu.dot_dimension_numbers<[1], [1], [0], [0], [0, 0, 1, 0], [], []>} : vector<8x32xbf16>, vector<8x32xbf16>, vector<8x8xf32> -> vector<8x8xf32>
    %29 = vector.broadcast %21 : vector<8x1xf32> to vector<8x8xf32>
    %30 = arith.addf %28, %29 : vector<8x8xf32>
    %cst_14 = arith.constant dense<0xFF800000> : vector<8xf32>
    %31 = vector.multi_reduction <maximumf>, %30, %cst_14 [0] : vector<8x8xf32> to vector<8xf32>
    %32 = vector.shape_cast %31 : vector<8xf32> to vector<1x8xf32>
    %33 = vector.broadcast %32 : vector<1x8xf32> to vector<8x8xf32>
    %34 = arith.subf %30, %33 : vector<8x8xf32>
    %35 = math.exp %34 : vector<8x8xf32>
    %cst_15 = arith.constant dense<0.000000e+00> : vector<8xf32>
    %36 = vector.multi_reduction <add>, %35, %cst_15 [0] : vector<8x8xf32> to vector<8xf32>
    %37 = vector.shape_cast %36 : vector<8xf32> to vector<1x8xf32>
    %38 = tpu.reciprocal %37 {approx = true} : vector<1x8xf32> -> vector<1x8xf32>
    %39 = vector.broadcast %38 : vector<1x8xf32> to vector<8x8xf32>
    %40 = arith.mulf %35, %39 : vector<8x8xf32>
    %41 = arith.truncf %40 : vector<8x8xf32> to vector<8x8xbf16>
    %42 = vector.extract_strided_slice %17 {offsets = [0, 0], sizes = [8, 16], strides = [1, 1]} : vector<8x32xbf16> to vector<8x16xbf16>
    %cst_16 = arith.constant dense<0.000000e+00> : vector<8x16xf32>
    %43 = tpu.matmul %41, %42, %cst_16 {dimension_numbers = #tpu.dot_dimension_numbers<[1], [0], [0], [1], [0, 0, 1, 1], [], []>} : vector<8x8xbf16>, vector<8x16xbf16>, vector<8x16xf32> -> vector<8x16xf32>
    %c0_17 = arith.constant 0 : index
    %c0_18 = arith.constant 0 : index
    %c0_19 = arith.constant 0 : index
    %44 = vector.load %arg6[%c0_17, %c0_18, %c0_19] : memref<1x8x32xf32, #tpu.memory_space<vmem>>, vector<1x8x16xf32>
    %45 = vector.shape_cast %44 : vector<1x8x16xf32> to vector<8x16xf32>
    %46 = vector.shape_cast %43 : vector<8x16xf32> to vector<1x8x16xf32>
    tpu.vector_store %arg6[%c0_17, %c0_18, %c0_19], %46 {strides = array<i32>} : memref<1x8x32xf32, #tpu.memory_space<vmem>>, vector<1x8x16xf32>,
    %47 = vector.extract_strided_slice %8 {offsets = [0, 16], sizes = [8, 16], strides = [1, 1]} : vector<8x32xbf16> to vector<8x16xbf16>
    %48 = vector.extract_strided_slice %13 {offsets = [0, 16], sizes = [8, 16], strides = [1, 1]} : vector<8x32xbf16> to vector<8x16xbf16>
    %49 = tpu.concatenate %47, %48 in 1 : vector<8x16xbf16>, vector<8x16xbf16> -> vector<8x32xbf16>
    %50 = vector.extract_strided_slice %15 {offsets = [0, 16], sizes = [8, 16], strides = [1, 1]} : vector<8x32xbf16> to vector<8x16xbf16>
    %51 = vector.extract_strided_slice %19 {offsets = [0, 16], sizes = [8, 16], strides = [1, 1]} : vector<8x32xbf16> to vector<8x16xbf16>
    %52 = tpu.concatenate %50, %51 in 1 : vector<8x16xbf16>, vector<8x16xbf16> -> vector<8x32xbf16>
    %cst_20 = arith.constant dense<0.000000e+00> : vector<8x8xf32>
    %53 = tpu.matmul %49, %52, %cst_20 {dimension_numbers = #tpu.dot_dimension_numbers<[1], [1], [0], [0], [0, 0, 1, 0], [], []>} : vector<8x32xbf16>, vector<8x32xbf16>, vector<8x8xf32> -> vector<8x8xf32>
    %54 = vector.broadcast %21 : vector<8x1xf32> to vector<8x8xf32>
    %55 = arith.addf %53, %54 : vector<8x8xf32>
    %cst_21 = arith.constant dense<0xFF800000> : vector<8xf32>
    %56 = vector.multi_reduction <maximumf>, %55, %cst_21 [0] : vector<8x8xf32> to vector<8xf32>
    %57 = vector.shape_cast %56 : vector<8xf32> to vector<1x8xf32>
    %58 = vector.broadcast %57 : vector<1x8xf32> to vector<8x8xf32>
    %59 = arith.subf %55, %58 : vector<8x8xf32>
    %60 = math.exp %59 : vector<8x8xf32>
    %cst_22 = arith.constant dense<0.000000e+00> : vector<8xf32>
    %61 = vector.multi_reduction <add>, %60, %cst_22 [0] : vector<8x8xf32> to vector<8xf32>
    %62 = vector.shape_cast %61 : vector<8xf32> to vector<1x8xf32>
    %63 = tpu.reciprocal %62 {approx = true} : vector<1x8xf32> -> vector<1x8xf32>
    %64 = vector.broadcast %63 : vector<1x8xf32> to vector<8x8xf32>
    %65 = arith.mulf %60, %64 : vector<8x8xf32>
    %66 = arith.truncf %65 : vector<8x8xf32> to vector<8x8xbf16>
    %67 = vector.extract_strided_slice %17 {offsets = [0, 16], sizes = [8, 16], strides = [1, 1]} : vector<8x32xbf16> to vector<8x16xbf16>
    %cst_23 = arith.constant dense<0.000000e+00> : vector<8x16xf32>
    %68 = tpu.matmul %66, %67, %cst_23 {dimension_numbers = #tpu.dot_dimension_numbers<[1], [0], [0], [1], [0, 0, 1, 1], [], []>} : vector<8x8xbf16>, vector<8x16xbf16>, vector<8x16xf32> -> vector<8x16xf32>
    %c0_24 = arith.constant 0 : index
    %c0_25 = arith.constant 0 : index
    %c16 = arith.constant 16 : index
    %69 = vector.load %arg6[%c0_24, %c0_25, %c16] : memref<1x8x32xf32, #tpu.memory_space<vmem>>, vector<1x8x16xf32>
    %70 = vector.shape_cast %69 : vector<1x8x16xf32> to vector<8x16xf32>
    %71 = vector.shape_cast %68 : vector<8x16xf32> to vector<1x8x16xf32>
    tpu.vector_store %arg6[%c0_24, %c0_25, %c16], %71 {strides = array<i32>} : memref<1x8x32xf32, #tpu.memory_space<vmem>>, vector<1x8x16xf32>,
    return
  }
  func.func @transform_0(%arg0: i32) -> (i32, i32, i32) {
    %c0_i32 = arith.constant 0 : i32
    %c0_i32_0 = arith.constant 0 : i32
    %c0_i32_1 = arith.constant 0 : i32
    return %arg0, %c0_i32, %c0_i32_0 : i32, i32, i32
  }
  func.func @transform_1(%arg0: i32) -> (i32, i32, i32) {
    %c0_i32 = arith.constant 0 : i32
    %c0_i32_0 = arith.constant 0 : i32
    %c0_i32_1 = arith.constant 0 : i32
    return %arg0, %c0_i32, %c0_i32_0 : i32, i32, i32
  }
  func.func @transform_2(%arg0: i32) -> (i32, i32) {
    %c0_i32 = arith.constant 0 : i32
    %c0_i32_0 = arith.constant 0 : i32
    %c0_i32_1 = arith.constant 0 : i32
    return %c0_i32, %c0_i32_0 : i32, i32
  }
  func.func @transform_3(%arg0: i32) -> (i32, i32, i32) {
    %c0_i32 = arith.constant 0 : i32
    %c0_i32_0 = arith.constant 0 : i32
    %c0_i32_1 = arith.constant 0 : i32
    return %arg0, %c0_i32, %c0_i32_0 : i32, i32, i32
  }
  func.func @transform_4(%arg0: i32) -> (i32, i32) {
    %c0_i32 = arith.constant 0 : i32
    %c0_i32_0 = arith.constant 0 : i32
    %c0_i32_1 = arith.constant 0 : i32
    return %c0_i32, %c0_i32_0 : i32, i32
  }
  func.func @transform_5(%arg0: i32) -> (i32, i32, i32) {
    %c0_i32 = arith.constant 0 : i32
    %c0_i32_0 = arith.constant 0 : i32
    %c0_i32_1 = arith.constant 0 : i32
    return %arg0, %c0_i32, %c0_i32_0 : i32, i32, i32
  }
}

module attributes {stable_mosaic.version = 11 : i64} {
  func.func @_linear_kernel(%arg0: i32, %arg1: i32, %arg2: i32, %arg3: memref<8x32xf32, #tpu.memory_space<vmem>>, %arg4: memref<32x32xbf16, #tpu.memory_space<vmem>>, %arg5: memref<1x32xf32, #tpu.memory_space<vmem>>, %arg6: memref<8x32xf32, #tpu.memory_space<vmem>>, %arg7: memref<1x32xf32, #tpu.memory_space<vmem>>, %arg8: memref<1x32xf32, #tpu.memory_space<vmem>>, %arg9: memref<8x32xf32, #tpu.memory_space<vmem>>, %arg10: memref<8x32xf32, #tpu.memory_space<vmem>>, %arg11: memref<8x32xf32, #tpu.memory_space<vmem>>) attributes {dimension_semantics = [#tpu.dimension_semantics<parallel>, #tpu.dimension_semantics<parallel>, #tpu.dimension_semantics<arbitrary>], iteration_bounds = array<i64: 2, 1, 1>, scalar_prefetch = 0 : i64, scratch_operands = 1 : i64, tpu.core_type = #tpu.core_type<tc>, window_params = [{transform_indices = @transform_0, window_bounds = array<i64: 8, 32>}, {transform_indices = @transform_1, window_bounds = array<i64: 32, 32>}, {transform_indices = @transform_2, window_bounds = array<i64: 1, 32>}, {transform_indices = @transform_3, window_bounds = array<i64: 8, 32>}, {pipeline_mode = #tpu.pipeline_mode<synchronous>, transform_indices = @transform_4, window_bounds = array<i64: 1, 32>}, {pipeline_mode = #tpu.pipeline_mode<synchronous>, transform_indices = @transform_5, window_bounds = array<i64: 1, 32>}, {transform_indices = @transform_6, window_bounds = array<i64: 8, 32>}, {transform_indices = @transform_7, window_bounds = array<i64: 8, 32>}]} {
    %c0 = arith.constant 0 : index
    %c0_0 = arith.constant 0 : index
    %0 = vector.load %arg3[%c0, %c0_0] : memref<8x32xf32, #tpu.memory_space<vmem>>, vector<8x32xf32>
    %1 = arith.truncf %0 : vector<8x32xf32> to vector<8x32xbf16>
    %c0_1 = arith.constant 0 : index
    %c0_2 = arith.constant 0 : index
    %2 = vector.load %arg4[%c0_1, %c0_2] : memref<32x32xbf16, #tpu.memory_space<vmem>>, vector<32x32xbf16>
    %cst = arith.constant dense<0.000000e+00> : vector<8x32xf32>
    %3 = tpu.matmul %1, %2, %cst {dimension_numbers = #tpu.dot_dimension_numbers<[1], [0], [0], [1], [0, 0, 1, 1], [], []>} : vector<8x32xbf16>, vector<32x32xbf16>, vector<8x32xf32> -> vector<8x32xf32>
    %c0_3 = arith.constant 0 : index
    %c0_4 = arith.constant 0 : index
    %4 = vector.load %arg5[%c0_3, %c0_4] : memref<1x32xf32, #tpu.memory_space<vmem>>, vector<1x32xf32>
    %5 = vector.broadcast %4 : vector<1x32xf32> to vector<8x32xf32>
    %6 = arith.addf %3, %5 : vector<8x32xf32>
    %c0_5 = arith.constant 0 : index
    %c0_6 = arith.constant 0 : index
    %7 = vector.load %arg6[%c0_5, %c0_6] : memref<8x32xf32, #tpu.memory_space<vmem>>, vector<8x32xf32>
    %8 = arith.addf %7, %6 : vector<8x32xf32>
    %c0_7 = arith.constant 0 : index
    %c0_8 = arith.constant 0 : index
    %9 = vector.load %arg7[%c0_7, %c0_8] : memref<1x32xf32, #tpu.memory_space<vmem>>, vector<1x32xf32>
    %c0_9 = arith.constant 0 : index
    %c0_10 = arith.constant 0 : index
    %10 = vector.load %arg8[%c0_9, %c0_10] : memref<1x32xf32, #tpu.memory_space<vmem>>, vector<1x32xf32>
    %cst_11 = arith.constant dense<0.000000e+00> : vector<8xf32>
    %11 = vector.multi_reduction <add>, %8, %cst_11 [1] : vector<8x32xf32> to vector<8xf32>
    %12 = vector.shape_cast %11 : vector<8xf32> to vector<8x1xf32>
    %cst_12 = arith.constant 3.200000e+01 : f32
    %13 = vector.broadcast %cst_12 : f32 to vector<8x1xf32>
    %14 = arith.divf %12, %13 : vector<8x1xf32>
    %15 = vector.broadcast %14 : vector<8x1xf32> to vector<8x32xf32>
    %16 = arith.subf %8, %15 : vector<8x32xf32>
    %17 = arith.mulf %16, %16 : vector<8x32xf32>
    %cst_13 = arith.constant dense<0.000000e+00> : vector<8xf32>
    %18 = vector.multi_reduction <add>, %17, %cst_13 [1] : vector<8x32xf32> to vector<8xf32>
    %19 = vector.shape_cast %18 : vector<8xf32> to vector<8x1xf32>
    %cst_14 = arith.constant 3.200000e+01 : f32
    %20 = vector.broadcast %cst_14 : f32 to vector<8x1xf32>
    %21 = arith.divf %19, %20 : vector<8x1xf32>
    %22 = vector.broadcast %14 : vector<8x1xf32> to vector<8x32xf32>
    %23 = arith.subf %8, %22 : vector<8x32xf32>
    %cst_15 = arith.constant 9.99999974E-6 : f32
    %24 = vector.broadcast %cst_15 : f32 to vector<8x1xf32>
    %25 = arith.addf %21, %24 : vector<8x1xf32>
    %26 = math.rsqrt %25 : vector<8x1xf32>
    %27 = vector.broadcast %26 : vector<8x1xf32> to vector<8x32xf32>
    %28 = arith.mulf %23, %27 : vector<8x32xf32>
    %29 = vector.broadcast %9 : vector<1x32xf32> to vector<8x32xf32>
    %30 = arith.mulf %28, %29 : vector<8x32xf32>
    %31 = vector.broadcast %10 : vector<1x32xf32> to vector<8x32xf32>
    %32 = arith.addf %30, %31 : vector<8x32xf32>
    %c0_16 = arith.constant 0 : index
    %c0_17 = arith.constant 0 : index
    %33 = vector.load %arg9[%c0_16, %c0_17] : memref<8x32xf32, #tpu.memory_space<vmem>>, vector<8x32xf32>
    %34 = arith.addf %33, %32 : vector<8x32xf32>
    %c0_18 = arith.constant 0 : index
    %c0_19 = arith.constant 0 : index
    %35 = vector.load %arg10[%c0_18, %c0_19] : memref<8x32xf32, #tpu.memory_space<vmem>>, vector<8x32xf32>
    tpu.vector_store %arg10[%c0_18, %c0_19], %34 {strides = array<i32>} : memref<8x32xf32, #tpu.memory_space<vmem>>, vector<8x32xf32>,
    return
  }
  func.func @transform_0(%arg0: i32, %arg1: i32, %arg2: i32) -> (i32, i32) {
    %c0_i32 = arith.constant 0 : i32
    return %arg0, %arg2 : i32, i32
  }
  func.func @transform_1(%arg0: i32, %arg1: i32, %arg2: i32) -> (i32, i32) {
    %c0_i32 = arith.constant 0 : i32
    return %arg2, %arg1 : i32, i32
  }
  func.func @transform_2(%arg0: i32, %arg1: i32, %arg2: i32) -> (i32, i32) {
    %c0_i32 = arith.constant 0 : i32
    %c0_i32_0 = arith.constant 0 : i32
    return %c0_i32, %arg1 : i32, i32
  }
  func.func @transform_3(%arg0: i32, %arg1: i32, %arg2: i32) -> (i32, i32) {
    %c0_i32 = arith.constant 0 : i32
    return %arg0, %arg1 : i32, i32
  }
  func.func @transform_4(%arg0: i32, %arg1: i32, %arg2: i32) -> (i32, i32) {
    %c0_i32 = arith.constant 0 : i32
    %c0_i32_0 = arith.constant 0 : i32
    %c0_i32_1 = arith.constant 0 : i32
    return %c0_i32, %c0_i32_0 : i32, i32
  }
  func.func @transform_5(%arg0: i32, %arg1: i32, %arg2: i32) -> (i32, i32) {
    %c0_i32 = arith.constant 0 : i32
    %c0_i32_0 = arith.constant 0 : i32
    %c0_i32_1 = arith.constant 0 : i32
    return %c0_i32, %c0_i32_0 : i32, i32
  }
  func.func @transform_6(%arg0: i32, %arg1: i32, %arg2: i32) -> (i32, i32) {
    %c0_i32 = arith.constant 0 : i32
    return %arg0, %arg1 : i32, i32
  }
  func.func @transform_7(%arg0: i32, %arg1: i32, %arg2: i32) -> (i32, i32) {
    %c0_i32 = arith.constant 0 : i32
    return %arg0, %arg1 : i32, i32
  }
}

module attributes {stable_mosaic.version = 11 : i64} {
  func.func @_linear_kernel(%arg0: i32, %arg1: i32, %arg2: i32, %arg3: memref<8x32xf32, #tpu.memory_space<vmem>>, %arg4: memref<32x32xbf16, #tpu.memory_space<vmem>>, %arg5: memref<8x32xf32, #tpu.memory_space<vmem>>, %arg6: memref<8x32xf32, #tpu.memory_space<vmem>>) attributes {dimension_semantics = [#tpu.dimension_semantics<parallel>, #tpu.dimension_semantics<parallel>, #tpu.dimension_semantics<arbitrary>], iteration_bounds = array<i64: 2, 1, 1>, scalar_prefetch = 0 : i64, scratch_operands = 1 : i64, tpu.core_type = #tpu.core_type<tc>, window_params = [{transform_indices = @transform_0, window_bounds = array<i64: 8, 32>}, {transform_indices = @transform_1, window_bounds = array<i64: 32, 32>}, {transform_indices = @transform_2, window_bounds = array<i64: 8, 32>}]} {
    %c0 = arith.constant 0 : index
    %c0_0 = arith.constant 0 : index
    %0 = vector.load %arg3[%c0, %c0_0] : memref<8x32xf32, #tpu.memory_space<vmem>>, vector<8x32xf32>
    %1 = arith.truncf %0 : vector<8x32xf32> to vector<8x32xbf16>
    %c0_1 = arith.constant 0 : index
    %c0_2 = arith.constant 0 : index
    %2 = vector.load %arg4[%c0_1, %c0_2] : memref<32x32xbf16, #tpu.memory_space<vmem>>, vector<32x32xbf16>
    %cst = arith.constant dense<0.000000e+00> : vector<8x32xf32>
    %3 = tpu.matmul %1, %2, %cst {dimension_numbers = #tpu.dot_dimension_numbers<[1], [0], [0], [1], [0, 0, 1, 1], [], []>} : vector<8x32xbf16>, vector<32x32xbf16>, vector<8x32xf32> -> vector<8x32xf32>
    %c0_3 = arith.constant 0 : index
    %c0_4 = arith.constant 0 : index
    %4 = vector.load %arg5[%c0_3, %c0_4] : memref<8x32xf32, #tpu.memory_space<vmem>>, vector<8x32xf32>
    tpu.vector_store %arg5[%c0_3, %c0_4], %3 {strides = array<i32>} : memref<8x32xf32, #tpu.memory_space<vmem>>, vector<8x32xf32>,
    return
  }
  func.func @transform_0(%arg0: i32, %arg1: i32, %arg2: i32) -> (i32, i32) {
    %c0_i32 = arith.constant 0 : i32
    return %arg0, %arg2 : i32, i32
  }
  func.func @transform_1(%arg0: i32, %arg1: i32, %arg2: i32) -> (i32, i32) {
    %c0_i32 = arith.constant 0 : i32
    return %arg2, %arg1 : i32, i32
  }
  func.func @transform_2(%arg0: i32, %arg1: i32, %arg2: i32) -> (i32, i32) {
    %c0_i32 = arith.constant 0 : i32
    return %arg0, %arg1 : i32, i32
  }
}

module attributes {stable_mosaic.version = 11 : i64} {
  func.func @_linear_kernel(%arg0: i32, %arg1: i32, %arg2: i32, %arg3: memref<8x32xf32, #tpu.memory_space<vmem>>, %arg4: memref<32x64xbf16, #tpu.memory_space<vmem>>, %arg5: memref<8x64xf32, #tpu.memory_space<vmem>>, %arg6: memref<8x64xf32, #tpu.memory_space<vmem>>) attributes {dimension_semantics = [#tpu.dimension_semantics<parallel>, #tpu.dimension_semantics<parallel>, #tpu.dimension_semantics<arbitrary>], iteration_bounds = array<i64: 2, 1, 1>, scalar_prefetch = 0 : i64, scratch_operands = 1 : i64, tpu.core_type = #tpu.core_type<tc>, window_params = [{transform_indices = @transform_0, window_bounds = array<i64: 8, 32>}, {transform_indices = @transform_1, window_bounds = array<i64: 32, 64>}, {transform_indices = @transform_2, window_bounds = array<i64: 8, 64>}]} {
    %c0 = arith.constant 0 : index
    %c0_0 = arith.constant 0 : index
    %0 = vector.load %arg3[%c0, %c0_0] : memref<8x32xf32, #tpu.memory_space<vmem>>, vector<8x32xf32>
    %1 = arith.truncf %0 : vector<8x32xf32> to vector<8x32xbf16>
    %c0_1 = arith.constant 0 : index
    %c0_2 = arith.constant 0 : index
    %2 = vector.load %arg4[%c0_1, %c0_2] : memref<32x64xbf16, #tpu.memory_space<vmem>>, vector<32x64xbf16>
    %cst = arith.constant dense<0.000000e+00> : vector<8x64xf32>
    %3 = tpu.matmul %1, %2, %cst {dimension_numbers = #tpu.dot_dimension_numbers<[1], [0], [0], [1], [0, 0, 1, 1], [], []>} : vector<8x32xbf16>, vector<32x64xbf16>, vector<8x64xf32> -> vector<8x64xf32>
    %c0_3 = arith.constant 0 : index
    %c0_4 = arith.constant 0 : index
    %4 = vector.load %arg5[%c0_3, %c0_4] : memref<8x64xf32, #tpu.memory_space<vmem>>, vector<8x64xf32>
    tpu.vector_store %arg5[%c0_3, %c0_4], %3 {strides = array<i32>} : memref<8x64xf32, #tpu.memory_space<vmem>>, vector<8x64xf32>,
    return
  }
  func.func @transform_0(%arg0: i32, %arg1: i32, %arg2: i32) -> (i32, i32) {
    %c0_i32 = arith.constant 0 : i32
    return %arg0, %arg2 : i32, i32
  }
  func.func @transform_1(%arg0: i32, %arg1: i32, %arg2: i32) -> (i32, i32) {
    %c0_i32 = arith.constant 0 : i32
    return %arg2, %arg1 : i32, i32
  }
  func.func @transform_2(%arg0: i32, %arg1: i32, %arg2: i32) -> (i32, i32) {
    %c0_i32 = arith.constant 0 : i32
    return %arg0, %arg1 : i32, i32
  }
}

module attributes {stable_mosaic.version = 11 : i64} {
  func.func @_linear_kernel(%arg0: i32, %arg1: i32, %arg2: i32, %arg3: memref<8x32xf32, #tpu.memory_space<vmem>>, %arg4: memref<32x64xbf16, #tpu.memory_space<vmem>>, %arg5: memref<1x64xf32, #tpu.memory_space<vmem>>, %arg6: memref<8x64xf32, #tpu.memory_space<vmem>>, %arg7: memref<8x64xf32, #tpu.memory_space<vmem>>) attributes {dimension_semantics = [#tpu.dimension_semantics<parallel>, #tpu.dimension_semantics<parallel>, #tpu.dimension_semantics<arbitrary>], iteration_bounds = array<i64: 2, 1, 1>, scalar_prefetch = 0 : i64, scratch_operands = 1 : i64, tpu.core_type = #tpu.core_type<tc>, window_params = [{transform_indices = @transform_0, window_bounds = array<i64: 8, 32>}, {transform_indices = @transform_1, window_bounds = array<i64: 32, 64>}, {transform_indices = @transform_2, window_bounds = array<i64: 1, 64>}, {transform_indices = @transform_3, window_bounds = array<i64: 8, 64>}]} {
    %c0 = arith.constant 0 : index
    %c0_0 = arith.constant 0 : index
    %0 = vector.load %arg3[%c0, %c0_0] : memref<8x32xf32, #tpu.memory_space<vmem>>, vector<8x32xf32>
    %1 = arith.truncf %0 : vector<8x32xf32> to vector<8x32xbf16>
    %c0_1 = arith.constant 0 : index
    %c0_2 = arith.constant 0 : index
    %2 = vector.load %arg4[%c0_1, %c0_2] : memref<32x64xbf16, #tpu.memory_space<vmem>>, vector<32x64xbf16>
    %cst = arith.constant dense<0.000000e+00> : vector<8x64xf32>
    %3 = tpu.matmul %1, %2, %cst {dimension_numbers = #tpu.dot_dimension_numbers<[1], [0], [0], [1], [0, 0, 1, 1], [], []>} : vector<8x32xbf16>, vector<32x64xbf16>, vector<8x64xf32> -> vector<8x64xf32>
    %c0_3 = arith.constant 0 : index
    %c0_4 = arith.constant 0 : index
    %4 = vector.load %arg5[%c0_3, %c0_4] : memref<1x64xf32, #tpu.memory_space<vmem>>, vector<1x64xf32>
    %5 = vector.broadcast %4 : vector<1x64xf32> to vector<8x64xf32>
    %6 = arith.addf %3, %5 : vector<8x64xf32>
    %cst_5 = arith.constant 5.000000e-01 : f32
    %7 = vector.broadcast %cst_5 : f32 to vector<8x64xf32>
    %8 = arith.mulf %7, %6 : vector<8x64xf32>
    %cst_6 = arith.constant 0.707106769 : f32
    %9 = vector.broadcast %cst_6 : f32 to vector<8x64xf32>
    %10 = arith.mulf %6, %9 : vector<8x64xf32>
    %cst_7 = arith.constant 0.000000e+00 : f32
    %11 = vector.broadcast %cst_7 : f32 to vector<8x64xf32>
    %12 = arith.cmpf oge, %10, %11 : vector<8x64xf32>
    %cst_8 = arith.constant 1.000000e+00 : f32
    %cst_9 = arith.constant -1.000000e+00 : f32
    %13 = vector.broadcast %cst_8 : f32 to vector<8x64xf32>
    %14 = vector.broadcast %cst_9 : f32 to vector<8x64xf32>
    %15 = arith.select %12, %13, %14 : vector<8x64xi1>, vector<8x64xf32>
    %16 = math.absf %10 : vector<8x64xf32>
    %cst_10 = arith.constant 0.327591091 : f32
    %17 = vector.broadcast %cst_10 : f32 to vector<8x64xf32>
    %18 = arith.mulf %17, %16 : vector<8x64xf32>
    %cst_11 = arith.constant 1.000000e+00 : f32
    %19 = vector.broadcast %cst_11 : f32 to vector<8x64xf32>
    %20 = arith.addf %19, %18 : vector<8x64xf32>
    %21 = tpu.reciprocal %20 {approx = true} : vector<8x64xf32> -> vector<8x64xf32>
    %cst_12 = arith.constant 1.06140542 : f32
    %22 = vector.broadcast %cst_12 : f32 to vector<8x64xf32>
    %23 = arith.mulf %22, %21 : vector<8x64xf32>
    %cst_13 = arith.constant -1.45315206 : f32
    %24 = vector.broadcast %cst_13 : f32 to vector<8x64xf32>
    %25 = arith.addf %23, %24 : vector<8x64xf32>
    %26 = arith.mulf %25, %21 : vector<8x64xf32>
    %cst_14 = arith.constant 1.42141378 : f32
    %27 = vector.broadcast %cst_14 : f32 to vector<8x64xf32>
    %28 = arith.addf %26, %27 : vector<8x64xf32>
    %29 = arith.mulf %28, %21 : vector<8x64xf32>
    %cst_15 = arith.constant -0.284496725 : f32
    %30 = vector.broadcast %cst_15 : f32 to vector<8x64xf32>
    %31 = arith.addf %29, %30 : vector<8x64xf32>
    %32 = arith.mulf %31, %21 : vector<8x64xf32>
    %cst_16 = arith.constant 0.254829586 : f32
    %33 = vector.broadcast %cst_16 : f32 to vector<8x64xf32>
    %34 = arith.addf %32, %33 : vector<8x64xf32>
    %35 = arith.mulf %34, %21 : vector<8x64xf32>
    %cst_17 = arith.constant 0.000000e+00 : f32
    %36 = vector.broadcast %cst_17 : f32 to vector<8x64xf32>
    %37 = arith.subf %36, %16 : vector<8x64xf32>
    %38 = arith.mulf %37, %16 : vector<8x64xf32>
    %39 = math.exp %38 : vector<8x64xf32>
    %40 = arith.mulf %35, %39 : vector<8x64xf32>
    %cst_18 = arith.constant 1.000000e+00 : f32
    %41 = vector.broadcast %cst_18 : f32 to vector<8x64xf32>
    %42 = arith.subf %41, %40 : vector<8x64xf32>
    %43 = arith.mulf %15, %42 : vector<8x64xf32>
    %cst_19 = arith.constant 1.000000e+00 : f32
    %44 = vector.broadcast %cst_19 : f32 to vector<8x64xf32>
    %45 = arith.addf %44, %43 : vector<8x64xf32>
    %46 = arith.mulf %8, %45 : vector<8x64xf32>
    %c0_20 = arith.constant 0 : index
    %c0_21 = arith.constant 0 : index
    %47 = vector.load %arg6[%c0_20, %c0_21] : memref<8x64xf32, #tpu.memory_space<vmem>>, vector<8x64xf32>
    tpu.vector_store %arg6[%c0_20, %c0_21], %46 {strides = array<i32>} : memref<8x64xf32, #tpu.memory_space<vmem>>, vector<8x64xf32>,
    return
  }
  func.func @transform_0(%arg0: i32, %arg1: i32, %arg2: i32) -> (i32, i32) {
    %c0_i32 = arith.constant 0 : i32
    return %arg0, %arg2 : i32, i32
  }
  func.func @transform_1(%arg0: i32, %arg1: i32, %arg2: i32) -> (i32, i32) {
    %c0_i32 = arith.constant 0 : i32
    return %arg2, %arg1 : i32, i32
  }
  func.func @transform_2(%arg0: i32, %arg1: i32, %arg2: i32) -> (i32, i32) {
    %c0_i32 = arith.constant 0 : i32
    %c0_i32_0 = arith.constant 0 : i32
    return %c0_i32, %arg1 : i32, i32
  }
  func.func @transform_3(%arg0: i32, %arg1: i32, %arg2: i32) -> (i32, i32) {
    %c0_i32 = arith.constant 0 : i32
    return %arg0, %arg1 : i32, i32
  }
}

module attributes {stable_mosaic.version = 11 : i64} {
  func.func @_cross_attn_kernel(%arg0: i32, %arg1: memref<1x8x32xf32, #tpu.memory_space<vmem>>, %arg2: memref<1x8x64xf32, #tpu.memory_space<vmem>>, %arg3: memref<1x8x32xf32, #tpu.memory_space<vmem>>) attributes {dimension_semantics = [#tpu.dimension_semantics<parallel>], iteration_bounds = array<i64: 2>, scalar_prefetch = 0 : i64, scratch_operands = 0 : i64, tpu.core_type = #tpu.core_type<tc>, window_params = [{transform_indices = @transform_0, window_bounds = array<i64: 1, 8, 32>}, {transform_indices = @transform_1, window_bounds = array<i64: 1, 8, 64>}, {transform_indices = @transform_2, window_bounds = array<i64: 1, 8, 32>}]} {
    %c0 = arith.constant 0 : index
    %c0_0 = arith.constant 0 : index
    %c0_1 = arith.constant 0 : index
    %0 = vector.load %arg1[%c0, %c0_0, %c0_1] : memref<1x8x32xf32, #tpu.memory_space<vmem>>, vector<1x8x32xf32>
    %1 = vector.shape_cast %0 : vector<1x8x32xf32> to vector<8x32xf32>
    %cst = arith.constant 2.500000e-01 : f32
    %2 = vector.broadcast %cst : f32 to vector<8x32xf32>
    %3 = arith.mulf %1, %2 : vector<8x32xf32>
    %4 = arith.truncf %3 : vector<8x32xf32> to vector<8x32xbf16>
    %c0_2 = arith.constant 0 : index
    %c0_3 = arith.constant 0 : index
    %c0_4 = arith.constant 0 : index
    %5 = vector.load %arg2[%c0_2, %c0_3, %c0_4] : memref<1x8x64xf32, #tpu.memory_space<vmem>>, vector<1x8x64xf32>
    %6 = vector.shape_cast %5 : vector<1x8x64xf32> to vector<8x64xf32>
    %7 = vector.extract_strided_slice %6 {offsets = [0, 0], sizes = [8, 32], strides = [1, 1]} : vector<8x64xf32> to vector<8x32xf32>
    %8 = arith.truncf %7 : vector<8x32xf32> to vector<8x32xbf16>
    %9 = vector.extract_strided_slice %6 {offsets = [0, 32], sizes = [8, 32], strides = [1, 1]} : vector<8x64xf32> to vector<8x32xf32>
    %10 = arith.truncf %9 : vector<8x32xf32> to vector<8x32xbf16>
    %11 = vector.extract_strided_slice %4 {offsets = [0, 0], sizes = [8, 16], strides = [1, 1]} : vector<8x32xbf16> to vector<8x16xbf16>
    %12 = vector.extract_strided_slice %8 {offsets = [0, 0], sizes = [8, 16], strides = [1, 1]} : vector<8x32xbf16> to vector<8x16xbf16>
    %cst_5 = arith.constant dense<0.000000e+00> : vector<8x8xf32>
    %13 = tpu.matmul %11, %12, %cst_5 {dimension_numbers = #tpu.dot_dimension_numbers<[1], [1], [0], [0], [0, 0, 1, 0], [], []>} : vector<8x16xbf16>, vector<8x16xbf16>, vector<8x8xf32> -> vector<8x8xf32>
    %cst_6 = arith.constant dense<0xFF800000> : vector<8xf32>
    %14 = vector.multi_reduction <maximumf>, %13, %cst_6 [0] : vector<8x8xf32> to vector<8xf32>
    %15 = vector.shape_cast %14 : vector<8xf32> to vector<1x8xf32>
    %16 = vector.broadcast %15 : vector<1x8xf32> to vector<8x8xf32>
    %17 = arith.subf %13, %16 : vector<8x8xf32>
    %18 = math.exp %17 : vector<8x8xf32>
    %cst_7 = arith.constant dense<0.000000e+00> : vector<8xf32>
    %19 = vector.multi_reduction <add>, %18, %cst_7 [0] : vector<8x8xf32> to vector<8xf32>
    %20 = vector.shape_cast %19 : vector<8xf32> to vector<1x8xf32>
    %21 = tpu.reciprocal %20 {approx = true} : vector<1x8xf32> -> vector<1x8xf32>
    %22 = vector.broadcast %21 : vector<1x8xf32> to vector<8x8xf32>
    %23 = arith.mulf %18, %22 : vector<8x8xf32>
    %24 = arith.truncf %23 : vector<8x8xf32> to vector<8x8xbf16>
    %25 = vector.extract_strided_slice %10 {offsets = [0, 0], sizes = [8, 16], strides = [1, 1]} : vector<8x32xbf16> to vector<8x16xbf16>
    %cst_8 = arith.constant dense<0.000000e+00> : vector<8x16xf32>
    %26 = tpu.matmul %24, %25, %cst_8 {dimension_numbers = #tpu.dot_dimension_numbers<[1], [0], [0], [1], [0, 0, 1, 1], [], []>} : vector<8x8xbf16>, vector<8x16xbf16>, vector<8x16xf32> -> vector<8x16xf32>
    %c0_9 = arith.constant 0 : index
    %c0_10 = arith.constant 0 : index
    %c0_11 = arith.constant 0 : index
    %27 = vector.load %arg3[%c0_9, %c0_10, %c0_11] : memref<1x8x32xf32, #tpu.memory_space<vmem>>, vector<1x8x16xf32>
    %28 = vector.shape_cast %27 : vector<1x8x16xf32> to vector<8x16xf32>
    %29 = vector.shape_cast %26 : vector<8x16xf32> to vector<1x8x16xf32>
    tpu.vector_store %arg3[%c0_9, %c0_10, %c0_11], %29 {strides = array<i32>} : memref<1x8x32xf32, #tpu.memory_space<vmem>>, vector<1x8x16xf32>,
    %30 = vector.extract_strided_slice %4 {offsets = [0, 16], sizes = [8, 16], strides = [1, 1]} : vector<8x32xbf16> to vector<8x16xbf16>
    %31 = vector.extract_strided_slice %8 {offsets = [0, 16], sizes = [8, 16], strides = [1, 1]} : vector<8x32xbf16> to vector<8x16xbf16>
    %cst_12 = arith.constant dense<0.000000e+00> : vector<8x8xf32>
    %32 = tpu.matmul %30, %31, %cst_12 {dimension_numbers = #tpu.dot_dimension_numbers<[1], [1], [0], [0], [0, 0, 1, 0], [], []>} : vector<8x16xbf16>, vector<8x16xbf16>, vector<8x8xf32> -> vector<8x8xf32>
    %cst_13 = arith.constant dense<0xFF800000> : vector<8xf32>
    %33 = vector.multi_reduction <maximumf>, %32, %cst_13 [0] : vector<8x8xf32> to vector<8xf32>
    %34 = vector.shape_cast %33 : vector<8xf32> to vector<1x8xf32>
    %35 = vector.broadcast %34 : vector<1x8xf32> to vector<8x8xf32>
    %36 = arith.subf %32, %35 : vector<8x8xf32>
    %37 = math.exp %36 : vector<8x8xf32>
    %cst_14 = arith.constant dense<0.000000e+00> : vector<8xf32>
    %38 = vector.multi_reduction <add>, %37, %cst_14 [0] : vector<8x8xf32> to vector<8xf32>
    %39 = vector.shape_cast %38 : vector<8xf32> to vector<1x8xf32>
    %40 = tpu.reciprocal %39 {approx = true} : vector<1x8xf32> -> vector<1x8xf32>
    %41 = vector.broadcast %40 : vector<1x8xf32> to vector<8x8xf32>
    %42 = arith.mulf %37, %41 : vector<8x8xf32>
    %43 = arith.truncf %42 : vector<8x8xf32> to vector<8x8xbf16>
    %44 = vector.extract_strided_slice %10 {offsets = [0, 16], sizes = [8, 16], strides = [1, 1]} : vector<8x32xbf16> to vector<8x16xbf16>
    %cst_15 = arith.constant dense<0.000000e+00> : vector<8x16xf32>
    %45 = tpu.matmul %43, %44, %cst_15 {dimension_numbers = #tpu.dot_dimension_numbers<[1], [0], [0], [1], [0, 0, 1, 1], [], []>} : vector<8x8xbf16>, vector<8x16xbf16>, vector<8x16xf32> -> vector<8x16xf32>
    %c0_16 = arith.constant 0 : index
    %c0_17 = arith.constant 0 : index
    %c16 = arith.constant 16 : index
    %46 = vector.load %arg3[%c0_16, %c0_17, %c16] : memref<1x8x32xf32, #tpu.memory_space<vmem>>, vector<1x8x16xf32>
    %47 = vector.shape_cast %46 : vector<1x8x16xf32> to vector<8x16xf32>
    %48 = vector.shape_cast %45 : vector<8x16xf32> to vector<1x8x16xf32>
    tpu.vector_store %arg3[%c0_16, %c0_17, %c16], %48 {strides = array<i32>} : memref<1x8x32xf32, #tpu.memory_space<vmem>>, vector<1x8x16xf32>,
    return
  }
  func.func @transform_0(%arg0: i32) -> (i32, i32, i32) {
    %c0_i32 = arith.constant 0 : i32
    %c0_i32_0 = arith.constant 0 : i32
    %c0_i32_1 = arith.constant 0 : i32
    return %arg0, %c0_i32, %c0_i32_0 : i32, i32, i32
  }
  func.func @transform_1(%arg0: i32) -> (i32, i32, i32) {
    %c0_i32 = arith.constant 0 : i32
    %c0_i32_0 = arith.constant 0 : i32
    %c0_i32_1 = arith.constant 0 : i32
    return %arg0, %c0_i32, %c0_i32_0 : i32, i32, i32
  }
  func.func @transform_2(%arg0: i32) -> (i32, i32, i32) {
    %c0_i32 = arith.constant 0 : i32
    %c0_i32_0 = arith.constant 0 : i32
    %c0_i32_1 = arith.constant 0 : i32
    return %arg0, %c0_i32, %c0_i32_0 : i32, i32, i32
  }
}

module attributes {stable_mosaic.version = 11 : i64} {
  func.func @_linear_kernel(%arg0: i32, %arg1: i32, %arg2: i32, %arg3: memref<8x64xf32, #tpu.memory_space<vmem>>, %arg4: memref<64x32xbf16, #tpu.memory_space<vmem>>, %arg5: memref<1x32xf32, #tpu.memory_space<vmem>>, %arg6: memref<8x32xf32, #tpu.memory_space<vmem>>, %arg7: memref<8x32xf32, #tpu.memory_space<vmem>>, %arg8: memref<8x32xf32, #tpu.memory_space<vmem>>) attributes {dimension_semantics = [#tpu.dimension_semantics<parallel>, #tpu.dimension_semantics<parallel>, #tpu.dimension_semantics<arbitrary>], iteration_bounds = array<i64: 2, 1, 1>, scalar_prefetch = 0 : i64, scratch_operands = 1 : i64, tpu.core_type = #tpu.core_type<tc>, window_params = [{transform_indices = @transform_0, window_bounds = array<i64: 8, 64>}, {transform_indices = @transform_1, window_bounds = array<i64: 64, 32>}, {transform_indices = @transform_2, window_bounds = array<i64: 1, 32>}, {transform_indices = @transform_3, window_bounds = array<i64: 8, 32>}, {transform_indices = @transform_4, window_bounds = array<i64: 8, 32>}]} {
    %c0 = arith.constant 0 : index
    %c0_0 = arith.constant 0 : index
    %0 = vector.load %arg3[%c0, %c0_0] : memref<8x64xf32, #tpu.memory_space<vmem>>, vector<8x64xf32>
    %1 = arith.truncf %0 : vector<8x64xf32> to vector<8x64xbf16>
    %c0_1 = arith.constant 0 : index
    %c0_2 = arith.constant 0 : index
    %2 = vector.load %arg4[%c0_1, %c0_2] : memref<64x32xbf16, #tpu.memory_space<vmem>>, vector<64x32xbf16>
    %cst = arith.constant dense<0.000000e+00> : vector<8x32xf32>
    %3 = tpu.matmul %1, %2, %cst {dimension_numbers = #tpu.dot_dimension_numbers<[1], [0], [0], [1], [0, 0, 1, 1], [], []>} : vector<8x64xbf16>, vector<64x32xbf16>, vector<8x32xf32> -> vector<8x32xf32>
    %c0_3 = arith.constant 0 : index
    %c0_4 = arith.constant 0 : index
    %4 = vector.load %arg5[%c0_3, %c0_4] : memref<1x32xf32, #tpu.memory_space<vmem>>, vector<1x32xf32>
    %5 = vector.broadcast %4 : vector<1x32xf32> to vector<8x32xf32>
    %6 = arith.addf %3, %5 : vector<8x32xf32>
    %c0_5 = arith.constant 0 : index
    %c0_6 = arith.constant 0 : index
    %7 = vector.load %arg6[%c0_5, %c0_6] : memref<8x32xf32, #tpu.memory_space<vmem>>, vector<8x32xf32>
    %8 = arith.addf %7, %6 : vector<8x32xf32>
    %c0_7 = arith.constant 0 : index
    %c0_8 = arith.constant 0 : index
    %9 = vector.load %arg7[%c0_7, %c0_8] : memref<8x32xf32, #tpu.memory_space<vmem>>, vector<8x32xf32>
    tpu.vector_store %arg7[%c0_7, %c0_8], %8 {strides = array<i32>} : memref<8x32xf32, #tpu.memory_space<vmem>>, vector<8x32xf32>,
    return
  }
  func.func @transform_0(%arg0: i32, %arg1: i32, %arg2: i32) -> (i32, i32) {
    %c0_i32 = arith.constant 0 : i32
    return %arg0, %arg2 : i32, i32
  }
  func.func @transform_1(%arg0: i32, %arg1: i32, %arg2: i32) -> (i32, i32) {
    %c0_i32 = arith.constant 0 : i32
    return %arg2, %arg1 : i32, i32
  }
  func.func @transform_2(%arg0: i32, %arg1: i32, %arg2: i32) -> (i32, i32) {
    %c0_i32 = arith.constant 0 : i32
    %c0_i32_0 = arith.constant 0 : i32
    return %c0_i32, %arg1 : i32, i32
  }
  func.func @transform_3(%arg0: i32, %arg1: i32, %arg2: i32) -> (i32, i32) {
    %c0_i32 = arith.constant 0 : i32
    return %arg0, %arg1 : i32, i32
  }
  func.func @transform_4(%arg0: i32, %arg1: i32, %arg2: i32) -> (i32, i32) {
    %c0_i32 = arith.constant 0 : i32
    return %arg0, %arg1 : i32, i32
  }
}

module attributes {stable_mosaic.version = 11 : i64} {
  func.func @_linear_kernel(%arg0: i32, %arg1: i32, %arg2: i32, %arg3: memref<2x32xf32, #tpu.memory_space<vmem>>, %arg4: memref<32x128xbf16, #tpu.memory_space<vmem>>, %arg5: memref<1x128xf32, #tpu.memory_space<vmem>>, %arg6: memref<2x128xf32, #tpu.memory_space<vmem>>, %arg7: memref<2x128xf32, #tpu.memory_space<vmem>>) attributes {dimension_semantics = [#tpu.dimension_semantics<parallel>, #tpu.dimension_semantics<parallel>, #tpu.dimension_semantics<arbitrary>], iteration_bounds = array<i64: 1, 1, 1>, scalar_prefetch = 0 : i64, scratch_operands = 1 : i64, tpu.core_type = #tpu.core_type<tc>, window_params = [{transform_indices = @transform_0, window_bounds = array<i64: 2, 32>}, {transform_indices = @transform_1, window_bounds = array<i64: 32, 128>}, {transform_indices = @transform_2, window_bounds = array<i64: 1, 128>}, {transform_indices = @transform_3, window_bounds = array<i64: 2, 128>}]} {
    %c0 = arith.constant 0 : index
    %c0_0 = arith.constant 0 : index
    %0 = vector.load %arg3[%c0, %c0_0] : memref<2x32xf32, #tpu.memory_space<vmem>>, vector<2x32xf32>
    %1 = arith.truncf %0 : vector<2x32xf32> to vector<2x32xbf16>
    %c0_1 = arith.constant 0 : index
    %c0_2 = arith.constant 0 : index
    %2 = vector.load %arg4[%c0_1, %c0_2] : memref<32x128xbf16, #tpu.memory_space<vmem>>, vector<32x128xbf16>
    %cst = arith.constant dense<0.000000e+00> : vector<2x128xf32>
    %3 = tpu.matmul %1, %2, %cst {dimension_numbers = #tpu.dot_dimension_numbers<[1], [0], [0], [1], [0, 0, 1, 1], [], []>} : vector<2x32xbf16>, vector<32x128xbf16>, vector<2x128xf32> -> vector<2x128xf32>
    %c0_3 = arith.constant 0 : index
    %c0_4 = arith.constant 0 : index
    %4 = vector.load %arg5[%c0_3, %c0_4] : memref<1x128xf32, #tpu.memory_space<vmem>>, vector<1x128xf32>
    %5 = vector.broadcast %4 : vector<1x128xf32> to vector<2x128xf32>
    %6 = arith.addf %3, %5 : vector<2x128xf32>
    %c0_5 = arith.constant 0 : index
    %c0_6 = arith.constant 0 : index
    %7 = vector.load %arg6[%c0_5, %c0_6] : memref<2x128xf32, #tpu.memory_space<vmem>>, vector<2x128xf32>
    tpu.vector_store %arg6[%c0_5, %c0_6], %6 {strides = array<i32>} : memref<2x128xf32, #tpu.memory_space<vmem>>, vector<2x128xf32>,
    return
  }
  func.func @transform_0(%arg0: i32, %arg1: i32, %arg2: i32) -> (i32, i32) {
    %c0_i32 = arith.constant 0 : i32
    return %arg0, %arg2 : i32, i32
  }
  func.func @transform_1(%arg0: i32, %arg1: i32, %arg2: i32) -> (i32, i32) {
    %c0_i32 = arith.constant 0 : i32
    return %arg2, %arg1 : i32, i32
  }
  func.func @transform_2(%arg0: i32, %arg1: i32, %arg2: i32) -> (i32, i32) {
    %c0_i32 = arith.constant 0 : i32
    %c0_i32_0 = arith.constant 0 : i32
    return %c0_i32, %arg1 : i32, i32
  }
  func.func @transform_3(%arg0: i32, %arg1: i32, %arg2: i32) -> (i32, i32) {
    %c0_i32 = arith.constant 0 : i32
    return %arg0, %arg1 : i32, i32
  }
}

</mosaic_0001>

<bundles_post_ra>
// kernel: squeeze.6
= control target key start
LH: loop header
LB: loop body
LE: loop exit
PB: predicated region body
PF: predicated region fallthrough
CT: control target
= control target key end

     0   :  { %vm7_vm0 = vcmask 130048   ;;  %vm13_vm1 = vcmask 261248   ;;  %s39_s0 = inlined_call_operand.vmem [shape: f32[1,2,16], index: 0, kind: input, shape index: {}]   ;;  %s40_s1 = inlined_call_operand.vmem [shape: f32[1,32], index: 1, kind: output, shape index: {}]  }
   0x1   :  { %v4_v0 = vld [vmem:[%s39_s0] sm:$0x3]  ;;  %s22_s0 = smov 16  }
   0x2   :  { %5 = vst [vmem:[#allocation1] sm:$0x3] %v4_v0 }
   0x9   :  { %v10_v1 = vld [vmem:[#allocation1 + $0x1] sm:$0x1]   ;;  %v6_v2 = vld [vmem:[#allocation1] sm:$0x1]  }
   0xa   :  { %11 = vrot.lane.b32.xlu0 %v10_v1, %s22_s0  ;;  %8 = vst.msk [vmem:[#allocation0] sm:$0x1] %vm7_vm0, %v6_v2  }
  0x7c   :  { %v12_v3 = vpop.permute.xlu0 %11  }
  0x7d   :  { %14 = vst.msk [vmem:[#allocation0] sm:$0x1] %vm13_vm1, %v12_v3  }
  0x84   :  { %v18_v4 = vld [vmem:[#allocation0] sm:$0x1] }
  0x85   :  { %20 = vst [vmem:[%s40_s1] sm:$0x1] %v18_v4 }

// kernel: transformer_xl_forward.25
= control target key start
LH: loop header
LB: loop body
LE: loop exit
PB: predicated region body
PF: predicated region fallthrough
CT: control target
= control target key end

     0   :  { %s301_s12 = smov 0   ;;  %s327_s0 = inlined_call_operand.vmem [shape: f32[16,32], index: 0, kind: input, shape index: {}]   ;;  %s328_s1 = inlined_call_operand.vmem [shape: f32[1,32], index: 1, kind: input, shape index: {}]   ;;  %s329_s2 = inlined_call_operand.vmem [shape: f32[1,32], index: 2, kind: input, shape index: {}]   ;;  %s330_s3 = inlined_call_operand.vmem [shape: f32[16,32], index: 3, kind: output, shape index: {}]  }
   0x1 LB: > { %s252_s13 = sadd.s32 4294967295, %s279_s12   ;;  %p256_p0 = scmp.ge.s32.totalorder %s279_s12, 1  ;;  %s279_s12 = sphi %s301_s12, %s13_s12  }
   0x2   : > { %p136_p1 = scmp.lt.s32.totalorder %s279_s12, 3 }
   0x4   : > { %p137_p2 = pnand %p256_p0, %p136_p1 }
   0x5   : > { %p158_p3 = scmp.lt.s32.totalorder (!%p137_p2), %s252_s13, 1  ;;  %vm169_vm0 = vcmask (!%p137_p2), 261120   ;;  %v259_v11 = vld [vmem:[%s328_s1] ss:$0 sm:$0xff] (!%p137_p2) }
   0x6   : > { %140 = sbr.rel (%p137_p2) target bundleno = 331 (0x14b), region = 32  ;;  %v260_v13 = vld [vmem:[%s329_s2] ss:$0 sm:$0xff] (!%p137_p2) }
   0xd   : > { %s332_s13 = smov (!%p158_p3, %s252_s13), 1 }
   0xe   : > { %s257_s14 = sshll.u32 %s332_s13, 3 }
   0xf   : > { %s161_s17 = scalar_lea.vmem %s327_s0, %s257_s14  ;;  %s165_s24 = scalar_lea.vmem %s330_s3, %s257_s14 }
  0x10   : > { %v166_v0 = vld [vmem:[%s161_s17] sm:$0xff] }
  0x11   : > { %v170_v1 = vsel %vm169_vm0, %v166_v0, 0.0 }
  0x12   : > { %171 = vadd.xlane.f32.xlu0 %v170_v1 }
  0x9f   : > { %v172_v2 = vpop.xlane.xlu0 %171 }
  0xa0   : > { %v174_v3 = vmul.f32 0.03125, %v172_v2 }
  0xa2   : > { %v175_v4 = vsub.f32 %v166_v0, %v174_v3 }
  0xa4   : > { %v176_v5 = vmul.f32 %v175_v4, %v175_v4 }
  0xa6   : > { %v177_v6 = vsel %vm169_vm0, %v176_v5, 0.0 }
  0xa7   : > { %178 = vadd.xlane.f32.xlu0 %v177_v6 }
 0x134   : > { %v179_v7 = vpop.xlane.xlu0 %178 }
 0x135   : > { %v180_v8 = vmul.f32 0.03125, %v179_v7 }
 0x137   : > { %v181_v9 = vadd.f32 1e-05, %v180_v8 }
 0x139   : > { %271 = vrsqrt.f32 %v181_v9 }
 0x143   : > { %v272_v10 = vpop.eup %271 }
 0x144   : > { %v183_v12 = vmul.f32 %v272_v10, %v175_v4 }
 0x146   : > { %v190_v14 = vmul.f32 %v259_v11, %v183_v12 }
 0x148   : > { %v197_v15 = vadd.f32 %v260_v13, %v190_v14 }
 0x14a   : > { %198 = vst.msk [vmem:[%s165_s24] sm:$0xff] %vm169_vm0, %v197_v15 }
 0x14b PF: > { %s13_s12 = sadd.s32 1, %s279_s12  }
 0x14c   : > { %p10_p4 = scmp.ge.s32.totalorder %s13_s12, 4  }
 0x14e   :  { %12 = sbr.rel (!%p10_p4) target bundleno = 1 (0x1), region = 62 }

// kernel: transformer_xl_forward.26
= control target key start
LH: loop header
LB: loop body
LE: loop exit
PB: predicated region body
PF: predicated region fallthrough
CT: control target
= control target key end

     0   :  { %s464_s9 = smov 0   ;;  %s466_s10 = smov 0   ;;  %s503_s0 = inlined_call_operand.vmem [shape: f32[16,32], index: 0, kind: input, shape index: {}]   ;;  %s504_s1 = inlined_call_operand.vmem [shape: bf16[32,96], index: 1, kind: input, shape index: {}]   ;;  %s505_s2 = inlined_call_operand.vmem [shape: f32[16,96], index: 2, kind: output, shape index: {}]  }
   0x1   :  { %s468_s11 = smov 0  }
   0x2 LB: > { %s31_s12 = sadd.s32 1, %s441_s10  ;;  %p376_p0 = scmp.ge.s32.totalorder %s445_s11, 1  ;;  %s445_s11 = sphi %s468_s11, %s12_s11   ;;  %s441_s10 = sphi %s466_s10, %s507_s10   ;;  %s437_s9 = sphi %s464_s9, %s506_s9  }
   0x3   : > { %p33_p1 = scmp.ge.s32.totalorder %s31_s12, 2  ;;  %p153_p2 = scmp.lt.s32.totalorder %s445_s11, 3 }
   0x5   : > { %s509_s12 = smov (%p33_p1, %s31_s12), 0  ;;  %p154_p3 = pnand %p376_p0, %p153_p2 }
   0x6   : > { %v421_v0 = vld [vmem:[%s504_s1] sm:$0xff] (!%p154_p3)   ;;  %v447_v1 = vmov (!%p154_p3), 0.0   ;;  %v422_v2 = vld [vmem:[%s504_s1 + $0x8] sm:$0xff] (!%p154_p3)   ;;  %vm448_vm0 = vmmov (!%p154_p3), 0   ;;  %p187_p4 = scmp.lt.s32.totalorder (!%p154_p3), %s437_s9, 1  ;;  %vm229_vm1 = vcmask (!%p154_p3), 261120  }
   0x7   : > { %157 = sbr.rel (%p154_p3) target bundleno = 235 (0xeb), region = 28  ;;  %387 = vmatprep.subr.bf16.mxu0 (!%p154_p3), %v447_v1  ;;  %391 = vmatprep.mubr.msk.bf16.mxu0 (!%p154_p3), %vm448_vm0, %v447_v1  ;;  %vm273_vm2 = vcmask (!%p154_p3), 785408  }
   0x8   : > { %388 = vmatpush3.bf16.msra.mxu0 (!%p154_p3), %v421_v0 }
   0x9   : > { %389 = vmatprep.subr.bf16.mxu0 (!%p154_p3), %v447_v1 }
   0xc   : > { %390 = vmatpush3.bf16.msra.mxu0 (!%p154_p3), %v422_v2 }
   0xe   : > { %s511_s9 = smov (!%p187_p4, %s437_s9), 1 }
   0xf   : > { %s377_s17 = sshll.u32 %s511_s9, 3 }
  0x10   : > { %s193_s20 = scalar_lea.vmem %s503_s0, %s377_s17  ;;  %s209_s23 = scalar_lea.vmem %s505_s2, %s377_s17 }
  0x11   : > { %v211_v3 = vld [vmem:[%s193_s20] sm:$0xff] }
  0x12   : > { %v212_v4 = vpack.c.bf16 %v211_v3, %v211_v3 }
  0x14   : > { %392 = vmatmul.mubr.msk.bf16.vlgmr.msra.gmra.mrb[0].mxu0 %vm229_vm1, %v212_v4 }
  0xe7   : > { %v267_v5 = vpop.f32.mrb[0].mxu0 }
  0xe8   : > { %274 = vst.msk [vmem:[%s209_s23] sm:$0xff] %vm273_vm2, %v267_v5  ;;  %v393_v6 = vpop.f32.mrb[1].mxu0 }
  0xe9   : > { %v270_v7 = vpop.f32.mrb[2].mxu0 }
  0xea   : > { %v394_v8 = vpop.f32.mrb[3].mxu0 }
  0xeb PF: > { %s12_s11 = sadd.s32 1, %s445_s11   ;;  %s506_s9 = smov %s441_s10 }
  0xec   : > { %p9_p5 = scmp.ge.s32.totalorder %s12_s11, 4   ;;  %s507_s10 = smov %s509_s12 }
  0xee   :  { %11 = sbr.rel (!%p9_p5) target bundleno = 2 (0x2), region = 61 }

// kernel: transformer_xl_forward.27
= control target key start
LH: loop header
LB: loop body
LE: loop exit
PB: predicated region body
PF: predicated region fallthrough
CT: control target
= control target key end

     0   :  { %s738_s18 = smov 0   ;;  %s817_s0 = inlined_call_operand.vmem [shape: f32[2,8,96], index: 0, kind: input, shape index: {}]   ;;  %s818_s1 = inlined_call_operand.vmem [shape: f32[2,8,32], index: 1, kind: input, shape index: {}]   ;;  %s819_s2 = inlined_call_operand.vmem [shape: f32[8,32], index: 2, kind: input, shape index: {}]   ;;  %s820_s3 = inlined_call_operand.vmem [shape: f32[2,8,1], index: 3, kind: input, shape index: {}]   ;;  %s821_s4 = inlined_call_operand.vmem [shape: f32[1,32], index: 4, kind: input, shape index: {}]   ;;  %s822_s5 = inlined_call_operand.vmem [shape: f32[2,8,32], index: 5, kind: output, shape index: {}]  }
   0x1 LB: > { %s616_s19 = sadd.s32 4294967295, %s697_s18   ;;  %p620_p0 = scmp.ge.s32.totalorder %s697_s18, 1  ;;  %s697_s18 = sphi %s738_s18, %s15_s18  }
   0x2   : > { %p204_p1 = scmp.lt.s32.totalorder %s697_s18, 3 }
   0x4   : > { %p205_p2 = pnand %p620_p0, %p204_p1 }
   0x5   : > { %p238_p3 = scmp.lt.s32.totalorder (!%p205_p2), %s616_s19, 1  ;;  %v699_v0 = vmov (!%p205_p2), 0.0   ;;  %vm700_vm0 = vmmov (!%p205_p2), 0   ;;  %v270_v2 = vld [vmem:[%s819_s2] sm:$0xff] (!%p205_p2)  ;;  %s701_s6 = smov (!%p205_p2), 96   ;;  %v702_v9 = vmov (!%p205_p2), 0  }
   0x6   : > { %208 = sbr.rel (%p205_p2) target bundleno = 1023 (0x3ff), region = 40  ;;  %640 = vmatprep.subr.bf16.mxu0 (!%p205_p2), %v699_v0  ;;  %646 = vmatprep.subr.bf16.mxu1 (!%p205_p2), %v699_v0  ;;  %v625_v6 = vld [vmem:[%s821_s4] ss:$0 sm:$0xff] (!%p205_p2)  ;;  %v768_v7 = vpack.c.bf16 (!%p205_p2), %v270_v2, %v270_v2  ;;  %s703_s10 = smov (!%p205_p2), 16   ;;  %vm276_vm1 = vcmask (!%p205_p2), 130048   ;;  %vm294_vm2 = vcmask (!%p205_p2), 261120  }
   0x7   : > { %642 = vmatprep.mubr.msk.bf16.mxu0 (!%p205_p2), %vm700_vm0, %v699_v0  ;;  %648 = vmatprep.mubr.msk.bf16.mxu1 (!%p205_p2), %vm700_vm0, %v699_v0  ;;  %s704_s11 = smov (!%p205_p2), 64   ;;  %s705_s12 = smov (!%p205_p2), 80   ;;  %vm365_vm3 = vcmask (!%p205_p2), 1043456   ;;  %vm339_vm4 = vcmask (!%p205_p2), 64512   ;;  %vm537_vm5 = vcmask (!%p205_p2), 261248  }
   0x8   : > { %681 = vset.pattern.permute.xlu1 (!%p205_p2), %v702_v9  ;;  %682 = vset.pattern.permute.xlu0 (!%p205_p2), %v702_v9  ;;  %s706_s13 = smov (!%p205_p2), 112   ;;  %s707_s14 = smov (!%p205_p2), 48  }
   0xd   : > { %s824_s19 = smov (!%p238_p3, %s616_s19), 1 }
   0xe   : > { %s752_s20 = sshll.u32 %s824_s19, 3 }
   0xf   : > { %s241_s23 = scalar_lea.vmem %s817_s0, %s752_s20  ;;  %s245_s26 = scalar_lea.vmem %s818_s1, %s752_s20 }
  0x10   : > { %v255_v1 = vld [vmem:[%s241_s23] sm:$0xff]  ;;  %s249_s9 = scalar_lea.vmem %s820_s3, %s752_s20  ;;  %s805_s17 = scalar_lea.vmem %s822_s5, %s752_s20 }
  0x11   : > { %v266_v3 = vld [vmem:[%s245_s26] sm:$0xff]  ;;  %v269_v4 = vpack.c.bf16 %v255_v1, %v255_v1  ;;  %v263_v10 = vadd.f32 %v625_v6, %v255_v1 }
  0x12   : > { %v267_v5 = vmul.f32 0.25, %v266_v3  ;;  %v272_v11 = vld [vmem:[%s249_s9] sm:$0xff] }
  0x13   : > { %281 = vrot.lane.b32.xlu0 %v269_v4, %s701_s6  ;;  %v264_v12 = vmul.f32 0.25, %v263_v10 }
  0x14   : > { %v770_v8 = vpack.c.bf16 %v267_v5, %v267_v5 }
  0x15   : > { %v265_v13 = vpack.c.bf16 %v264_v12, %v264_v12 }
  0x16   : > { %274 = vrot.lane.b32.xlu1 %v770_v8, %s703_s10 }
  0x17   : > { %284 = vrot.lane.b32.xlu0 %v768_v7, %s703_s10 }
  0x1a   : > { %291 = vperm.xlu1 %681, %v272_v11  }
  0x1b   : > { %360 = vrot.lane.b32.xlu0 %v269_v4, %s704_s11 }
  0x1e   : > { %416 = vrot.lane.b32.xlu1 %v269_v4, %s705_s12 }
  0x1f   : > { %411 = vrot.lane.b32.xlu0 %v265_v13, %s706_s13 }
  0x22   : > { %485 = vrot.lane.b32.xlu1 %v269_v4, %s707_s14 }
  0x85   : > { %v282_v14 = vpop.permute.xlu0 %281 }
  0x88   : > { %v275_v18 = vpop.permute.xlu1 %274 }
  0x89   : > { %v285_v15 = vpop.permute.xlu0 %284  ;;  %v279_v19 = vsel %vm276_vm1, %v265_v13, %v275_v18 }
  0x8a   : > { %v288_v16 = vsel %vm276_vm1, %v282_v14, %v285_v15 }
  0x8b   : > { %v297_v17 = vsel %vm294_vm2, %v288_v16, 0 }
  0x8c   : > { %641 = vmatpush3.bf16.xpose.msra.mxu0 %v297_v17 }
  0x8d   : > { %658 = vmatprep.subr.bf16.mxu0 %v699_v0  ;;  %v361_v20 = vpop.permute.xlu0 %360 }
  0x8e   : > { %v367_v21 = vsel %vm365_vm3, %v361_v20, 0 }
  0x8f   : > { %647 = vmatpush3.bf16.msra.mxu1 %v367_v21 }
  0x90   : > { %652 = vmatprep.subr.bf16.mxu1 %v699_v0 }
  0x91   : > { %v412_v51 = vpop.permute.xlu0 %411 }
  0x92   : > { %v415_v52 = vsel %vm276_vm1, %v412_v51, %v770_v8 }
  0x93   : > { %643 = vmatmul.mubr.msk.bf16.vlgmr.msra.gmra.mrb[0].mxu0 %vm294_vm2, %v279_v19 }
  0x94   : > { %660 = vmatprep.mubr.msk.bf16.mxu0 %vm700_vm0, %v699_v0 }
  0x99   : > { %v292_v22 = vpop.permute.xlu1 %291 }
  0x9d   : > { %v417_v45 = vpop.permute.xlu1 %416 }
  0x9e   : > { %v420_v47 = vsel %vm276_vm1, %v417_v45, %v768_v7 }
  0x9f   : > { %v423_v49 = vsel %vm294_vm2, %v420_v47, 0 }
  0xa1   : > { %v486_v53 = vpop.permute.xlu1 %485 }
  0xa2   : > { %v491_v54 = vsel %vm365_vm3, %v486_v53, 0 }
  0xa3   : > { %659 = vmatpush3.bf16.msra.mxu0 %v491_v54 }
 0x166   : > { %v333_v23 = vpop.f32.mrb[0].mxu0 }
 0x167   : > { %v334_v24 = vadd.f32 %v333_v23, %v292_v22  ;;  %v644_v25 = vpop.f32.mrb[1].mxu0 }
 0x168   : > { %v336_v26 = vpop.f32.mrb[2].mxu0 }
 0x169   : > { %v340_v27 = vsel %vm339_vm4, %v334_v24, -inf  ;;  %v645_v28 = vpop.f32.mrb[3].mxu0 }
 0x16a   : > { %v341_v29 = vrot.slane %v340_v27, 4 }
 0x16c   : > { %v342_v30 = vmax.f32 %v340_v27, %v341_v29 }
 0x16e   : > { %v343_v31 = vrot.slane %v342_v30, 2 }
 0x170   : > { %v344_v32 = vmax.f32 %v342_v30, %v343_v31 }
 0x172   : > { %v345_v33 = vrot.slane %v344_v32, 1 }
 0x174   : > { %v346_v34 = vmax.f32 %v344_v32, %v345_v33 }
 0x176   : > { %v347_v35 = vsub.f32 %v334_v24, %v346_v34 }
 0x178   : > { %v348_v36 = vmul.f32 1.442695, %v347_v35 }
 0x17a   : > { %683 = vpow2.f32 %v348_v36 }
 0x184   : > { %v684_v37 = vpop.eup %683 }
 0x185   : > { %v350_v38 = vsel %vm339_vm4, %v684_v37, 0.0 }
 0x186   : > { %v351_v39 = vrot.slane %v350_v38, 4 }
 0x188   : > { %v352_v40 = vadd.f32 %v351_v39, %v350_v38 }
 0x18a   : > { %v353_v41 = vrot.slane %v352_v40, 2 }
 0x18c   : > { %v354_v42 = vadd.f32 %v353_v41, %v352_v40 }
 0x18e   : > { %v355_v43 = vrot.slane %v354_v42, 1 }
 0x190   : > { %v356_v44 = vadd.f32 %v355_v43, %v354_v42 }
 0x192   : > { %685 = vrcp.f32 %v356_v44 }
 0x19c   : > { %v686_v46 = vpop.eup %685 }
 0x19d   : > { %v358_v48 = vmul.f32 %v686_v46, %v684_v37 }
 0x19f   : > { %v359_v50 = vpack.c.bf16 %v358_v48, %v358_v48 }
 0x1a1   : > { %649 = vmatmul.mubr.msk.bf16.vlgmr.msra.gmra.mrb[0].mxu1 %vm339_vm4, %v359_v50 }
 0x1a2   : > { %653 = vmatpush3.bf16.xpose.msra.mxu1 %v423_v49  ;;  %654 = vmatprep.mubr.msk.bf16.mxu1 %vm700_vm0, %v699_v0 }
 0x1a9   : > { %655 = vmatmul.mubr.msk.bf16.vlgmr.msra.gmra.mrb[4].mxu1 %vm294_vm2, %v415_v52 }
 0x274   : > { %v403_v55 = vpop.f32.mrb[0].mxu1 }
 0x275   : > { %409 = vst.msk [vmem:[%s805_s17] sm:$0xff] %vm276_vm1, %v403_v55  ;;  %v650_v56 = vpop.f32.mrb[1].mxu1 }
 0x276   : > { %v406_v57 = vpop.f32.mrb[2].mxu1 }
 0x277   : > { %v651_v58 = vpop.f32.mrb[3].mxu1 }
 0x27c   : > { %v459_v59 = vpop.f32.mrb[4].mxu1 }
 0x27d   : > { %v460_v60 = vadd.f32 %v459_v59, %v292_v22  ;;  %v656_v61 = vpop.f32.mrb[5].mxu1 }
 0x27e   : > { %v462_v62 = vpop.f32.mrb[6].mxu1 }
 0x27f   : > { %v465_v63 = vsel %vm339_vm4, %v460_v60, -inf  ;;  %v657_v0 = vpop.f32.mrb[7].mxu1 }
 0x280   : > { %v466_v1 = vrot.slane %v465_v63, 4 }
 0x282   : > { %v467_v2 = vmax.f32 %v465_v63, %v466_v1 }
 0x284   : > { %v468_v3 = vrot.slane %v467_v2, 2 }
 0x286   : > { %v469_v4 = vmax.f32 %v467_v2, %v468_v3 }
 0x288   : > { %v470_v5 = vrot.slane %v469_v4, 1 }
 0x28a   : > { %v471_v6 = vmax.f32 %v469_v4, %v470_v5 }
 0x28c   : > { %v472_v7 = vsub.f32 %v460_v60, %v471_v6 }
 0x28e   : > { %v473_v8 = vmul.f32 1.442695, %v472_v7 }
 0x290   : > { %687 = vpow2.f32 %v473_v8 }
 0x29a   : > { %v688_v9 = vpop.eup %687 }
 0x29b   : > { %v475_v10 = vsel %vm339_vm4, %v688_v9, 0.0 }
 0x29c   : > { %v476_v11 = vrot.slane %v475_v10, 4 }
 0x29e   : > { %v477_v12 = vadd.f32 %v476_v11, %v475_v10 }
 0x2a0   : > { %v478_v13 = vrot.slane %v477_v12, 2 }
 0x2a2   : > { %v479_v14 = vadd.f32 %v478_v13, %v477_v12 }
 0x2a4   : > { %v480_v15 = vrot.slane %v479_v14, 1 }
 0x2a6   : > { %v481_v16 = vadd.f32 %v480_v15, %v479_v14 }
 0x2a8   : > { %689 = vrcp.f32 %v481_v16 }
 0x2b2   : > { %v690_v17 = vpop.eup %689 }
 0x2b3   : > { %v483_v18 = vmul.f32 %v690_v17, %v688_v9 }
 0x2b5   : > { %v484_v19 = vpack.c.bf16 %v483_v18, %v483_v18 }
 0x2b7   : > { %661 = vmatmul.mubr.msk.bf16.vlgmr.msra.gmra.mrb[4].mxu0 %vm339_vm4, %v484_v19 }
 0x38a   : > { %v527_v20 = vpop.f32.mrb[4].mxu0 }
 0x38b   : > { %534 = vrot.lane.b32.xlu0 %v527_v20, %s703_s10  ;;  %v662_v21 = vpop.f32.mrb[5].mxu0 }
 0x38c   : > { %v530_v22 = vpop.f32.mrb[6].mxu0 }
 0x38d   : > { %v663_v23 = vpop.f32.mrb[7].mxu0 }
 0x3fd   : > { %v535_v24 = vpop.permute.xlu0 %534 }
 0x3fe   : > { %538 = vst.msk [vmem:[%s805_s17] sm:$0xff] %vm537_vm5, %v535_v24 }
 0x3ff PF: > { %s15_s18 = sadd.s32 1, %s697_s18  }
 0x400   : > { %p12_p4 = scmp.ge.s32.totalorder %s15_s18, 4  }
 0x402   :  { %14 = sbr.rel (!%p12_p4) target bundleno = 1 (0x1), region = 76 }

// kernel: transformer_xl_forward.28
= control target key start
LH: loop header
LB: loop body
LE: loop exit
PB: predicated region body
PF: predicated region fallthrough
CT: control target
= control target key end

     0   :  { %s784_s24 = smov 0   ;;  %s786_s25 = smov 0   ;;  %s848_s0 = inlined_call_operand.vmem [shape: f32[16,32], index: 0, kind: input, shape index: {}]   ;;  %s849_s1 = inlined_call_operand.vmem [shape: bf16[32,32], index: 1, kind: input, shape index: {}]   ;;  %s850_s2 = inlined_call_operand.vmem [shape: f32[1,32], index: 2, kind: input, shape index: {}]   ;;  %s851_s3 = inlined_call_operand.vmem [shape: f32[16,32], index: 3, kind: input, shape index: {}]   ;;  %s852_s4 = inlined_call_operand.vmem [shape: f32[1,32], index: 4, kind: input, shape index: {}]   ;;  %s853_s5 = inlined_call_operand.vmem [shape: f32[1,32], index: 5, kind: input, shape index: {}]   ;;  %s854_s6 = inlined_call_operand.vmem [shape: f32[16,32], index: 6, kind: input, shape index: {}]   ;;  %s855_s7 = inlined_call_operand.vmem [shape: f32[16,32], index: 7, kind: output, shape index: {}]  }
   0x1   :  { %s788_s26 = smov 0  }
   0x2 LB: > { %s36_s27 = sadd.s32 1, %s736_s25  ;;  %p664_p0 = scmp.ge.s32.totalorder %s740_s26, 1  ;;  %s740_s26 = sphi %s788_s26, %s17_s26   ;;  %s736_s25 = sphi %s786_s25, %s857_s25   ;;  %s732_s24 = sphi %s784_s24, %s856_s24  }
   0x3   : > { %p38_p1 = scmp.ge.s32.totalorder %s36_s27, 2  ;;  %p314_p2 = scmp.lt.s32.totalorder %s740_s26, 3 }
   0x5   : > { %s859_s27 = smov (%p38_p1, %s36_s27), 0  ;;  %p315_p3 = pnand %p664_p0, %p314_p2 }
   0x6   : > { %v714_v0 = vld [vmem:[%s849_s1] sm:$0xff] (!%p315_p3)   ;;  %v742_v1 = vmov (!%p315_p3), 0.0   ;;  %v715_v2 = vld [vmem:[%s849_s1 + $0x8] sm:$0xff] (!%p315_p3)   ;;  %vm743_vm0 = vmmov (!%p315_p3), 0   ;;  %p375_p4 = scmp.lt.s32.totalorder (!%p315_p3), %s732_s24, 1  ;;  %vm441_vm1 = vcmask (!%p315_p3), 261120  }
   0x7   : > { %318 = sbr.rel (%p315_p3) target bundleno = 552 (0x228), region = 48  ;;  %680 = vmatprep.subr.bf16.mxu0 (!%p315_p3), %v742_v1  ;;  %684 = vmatprep.mubr.msk.bf16.mxu0 (!%p315_p3), %vm743_vm0, %v742_v1  ;;  %v669_v5 = vld [vmem:[%s850_s2] ss:$0 sm:$0xff] (!%p315_p3) }
   0x8   : > { %681 = vmatpush3.bf16.msra.mxu0 (!%p315_p3), %v714_v0  ;;  %v673_v23 = vld [vmem:[%s852_s4] ss:$0 sm:$0xff] (!%p315_p3) }
   0x9   : > { %682 = vmatprep.subr.bf16.mxu0 (!%p315_p3), %v742_v1  ;;  %v674_v25 = vld [vmem:[%s853_s5] ss:$0 sm:$0xff] (!%p315_p3) }
   0xc   : > { %683 = vmatpush3.bf16.msra.mxu0 (!%p315_p3), %v715_v2 }
   0xe   : > { %s861_s24 = smov (!%p375_p4, %s732_s24), 1 }
   0xf   : > { %s808_s9 = sshll.u32 %s861_s24, 3 }
  0x10   : > { %s381_s12 = scalar_lea.vmem %s848_s0, %s808_s9  ;;  %s400_s15 = scalar_lea.vmem %s851_s3, %s808_s9 }
  0x11   : > { %v416_v3 = vld [vmem:[%s381_s12] sm:$0xff]  ;;  %s407_s22 = scalar_lea.vmem %s854_s6, %s808_s9  ;;  %s414_s30 = scalar_lea.vmem %s855_s7, %s808_s9 }
  0x12   : > { %v417_v4 = vpack.c.bf16 %v416_v3, %v416_v3  ;;  %v485_v7 = vld [vmem:[%s400_s15] sm:$0xff] }
  0x13   : > { %v517_v27 = vld [vmem:[%s407_s22] sm:$0xff] }
  0x14   : > { %685 = vmatmul.mubr.msk.bf16.vlgmr.msra.gmra.mrb[0].mxu0 %vm441_vm1, %v417_v4 }
  0xe7   : > { %v479_v6 = vpop.f32.mrb[0].mxu0 }
  0xe8   : > { %v480_v8 = vadd.f32 %v669_v5, %v479_v6  ;;  %v686_v9 = vpop.f32.mrb[1].mxu0 }
  0xe9   : > { %v482_v10 = vpop.f32.mrb[2].mxu0 }
  0xea   : > { %v687_v11 = vpop.f32.mrb[3].mxu0  ;;  %v486_v12 = vadd.f32 %v485_v7, %v480_v8 }
  0xec   : > { %v489_v13 = vsel %vm441_vm1, %v486_v12, 0.0 }
  0xed   : > { %490 = vadd.xlane.f32.xlu0 %v489_v13 }
 0x17a   : > { %v491_v14 = vpop.xlane.xlu0 %490 }
 0x17b   : > { %v493_v15 = vmul.f32 0.03125, %v491_v14 }
 0x17d   : > { %v494_v16 = vsub.f32 %v486_v12, %v493_v15 }
 0x17f   : > { %v495_v17 = vmul.f32 %v494_v16, %v494_v16 }
 0x181   : > { %v496_v18 = vsel %vm441_vm1, %v495_v17, 0.0 }
 0x182   : > { %497 = vadd.xlane.f32.xlu0 %v496_v18 }
 0x20f   : > { %v498_v19 = vpop.xlane.xlu0 %497 }
 0x210   : > { %v499_v20 = vmul.f32 0.03125, %v498_v19 }
 0x212   : > { %v500_v21 = vadd.f32 1e-05, %v499_v20 }
 0x214   : > { %716 = vrsqrt.f32 %v500_v21 }
 0x21e   : > { %v717_v22 = vpop.eup %716 }
 0x21f   : > { %v502_v24 = vmul.f32 %v717_v22, %v494_v16 }
 0x221   : > { %v509_v26 = vmul.f32 %v673_v23, %v502_v24 }
 0x223   : > { %v516_v28 = vadd.f32 %v674_v25, %v509_v26 }
 0x225   : > { %v518_v29 = vadd.f32 %v517_v27, %v516_v28 }
 0x227   : > { %519 = vst.msk [vmem:[%s414_s30] sm:$0xff] %vm441_vm1, %v518_v29 }
 0x228 PF: > { %s17_s26 = sadd.s32 1, %s740_s26   ;;  %s856_s24 = smov %s736_s25 }
 0x229   : > { %p14_p5 = scmp.ge.s32.totalorder %s17_s26, 4   ;;  %s857_s25 = smov %s859_s27 }
 0x22b   :  { %16 = sbr.rel (!%p14_p5) target bundleno = 2 (0x2), region = 90 }

// kernel: transformer_xl_forward.30
= control target key start
LH: loop header
LB: loop body
LE: loop exit
PB: predicated region body
PF: predicated region fallthrough
CT: control target
= control target key end

     0   :  { %s463_s9 = smov 0   ;;  %s465_s10 = smov 0   ;;  %s502_s0 = inlined_call_operand.vmem [shape: f32[16,32], index: 0, kind: input, shape index: {}]   ;;  %s503_s1 = inlined_call_operand.vmem [shape: bf16[32,32], index: 1, kind: input, shape index: {}]   ;;  %s504_s2 = inlined_call_operand.vmem [shape: f32[16,32], index: 2, kind: output, shape index: {}]  }
   0x1   :  { %s467_s11 = smov 0  }
   0x2 LB: > { %s31_s12 = sadd.s32 1, %s440_s10  ;;  %p375_p0 = scmp.ge.s32.totalorder %s444_s11, 1  ;;  %s444_s11 = sphi %s467_s11, %s12_s11   ;;  %s440_s10 = sphi %s465_s10, %s506_s10   ;;  %s436_s9 = sphi %s463_s9, %s505_s9  }
   0x3   : > { %p33_p1 = scmp.ge.s32.totalorder %s31_s12, 2  ;;  %p153_p2 = scmp.lt.s32.totalorder %s444_s11, 3 }
   0x5   : > { %s508_s12 = smov (%p33_p1, %s31_s12), 0  ;;  %p154_p3 = pnand %p375_p0, %p153_p2 }
   0x6   : > { %v420_v0 = vld [vmem:[%s503_s1] sm:$0xff] (!%p154_p3)   ;;  %v446_v1 = vmov (!%p154_p3), 0.0   ;;  %v421_v2 = vld [vmem:[%s503_s1 + $0x8] sm:$0xff] (!%p154_p3)   ;;  %vm447_vm0 = vmmov (!%p154_p3), 0   ;;  %p187_p4 = scmp.lt.s32.totalorder (!%p154_p3), %s436_s9, 1  ;;  %vm229_vm1 = vcmask (!%p154_p3), 261120  }
   0x7   : > { %157 = sbr.rel (%p154_p3) target bundleno = 235 (0xeb), region = 28  ;;  %386 = vmatprep.subr.bf16.mxu0 (!%p154_p3), %v446_v1  ;;  %390 = vmatprep.mubr.msk.bf16.mxu0 (!%p154_p3), %vm447_vm0, %v446_v1 }
   0x8   : > { %387 = vmatpush3.bf16.msra.mxu0 (!%p154_p3), %v420_v0 }
   0x9   : > { %388 = vmatprep.subr.bf16.mxu0 (!%p154_p3), %v446_v1 }
   0xc   : > { %389 = vmatpush3.bf16.msra.mxu0 (!%p154_p3), %v421_v2 }
   0xe   : > { %s510_s9 = smov (!%p187_p4, %s436_s9), 1 }
   0xf   : > { %s376_s17 = sshll.u32 %s510_s9, 3 }
  0x10   : > { %s193_s20 = scalar_lea.vmem %s502_s0, %s376_s17  ;;  %s209_s23 = scalar_lea.vmem %s504_s2, %s376_s17 }
  0x11   : > { %v211_v3 = vld [vmem:[%s193_s20] sm:$0xff] }
  0x12   : > { %v212_v4 = vpack.c.bf16 %v211_v3, %v211_v3 }
  0x14   : > { %391 = vmatmul.mubr.msk.bf16.vlgmr.msra.gmra.mrb[0].mxu0 %vm229_vm1, %v212_v4 }
  0xe7   : > { %v267_v5 = vpop.f32.mrb[0].mxu0 }
  0xe8   : > { %273 = vst.msk [vmem:[%s209_s23] sm:$0xff] %vm229_vm1, %v267_v5  ;;  %v392_v6 = vpop.f32.mrb[1].mxu0 }
  0xe9   : > { %v270_v7 = vpop.f32.mrb[2].mxu0 }
  0xea   : > { %v393_v8 = vpop.f32.mrb[3].mxu0 }
  0xeb PF: > { %s12_s11 = sadd.s32 1, %s444_s11   ;;  %s505_s9 = smov %s440_s10 }
  0xec   : > { %p9_p5 = scmp.ge.s32.totalorder %s12_s11, 4   ;;  %s506_s10 = smov %s508_s12 }
  0xee   :  { %11 = sbr.rel (!%p9_p5) target bundleno = 2 (0x2), region = 61 }

// kernel: transformer_xl_forward.31
= control target key start
LH: loop header
LB: loop body
LE: loop exit
PB: predicated region body
PF: predicated region fallthrough
CT: control target
= control target key end

     0   :  { %s464_s9 = smov 0   ;;  %s466_s10 = smov 0   ;;  %s503_s0 = inlined_call_operand.vmem [shape: f32[16,32], index: 0, kind: input, shape index: {}]   ;;  %s504_s1 = inlined_call_operand.vmem [shape: bf16[32,64], index: 1, kind: input, shape index: {}]   ;;  %s505_s2 = inlined_call_operand.vmem [shape: f32[16,64], index: 2, kind: output, shape index: {}]  }
   0x1   :  { %s468_s11 = smov 0  }
   0x2 LB: > { %s31_s12 = sadd.s32 1, %s441_s10  ;;  %p376_p0 = scmp.ge.s32.totalorder %s445_s11, 1  ;;  %s445_s11 = sphi %s468_s11, %s12_s11   ;;  %s441_s10 = sphi %s466_s10, %s507_s10   ;;  %s437_s9 = sphi %s464_s9, %s506_s9  }
   0x3   : > { %p33_p1 = scmp.ge.s32.totalorder %s31_s12, 2  ;;  %p153_p2 = scmp.lt.s32.totalorder %s445_s11, 3 }
   0x5   : > { %s509_s12 = smov (%p33_p1, %s31_s12), 0  ;;  %p154_p3 = pnand %p376_p0, %p153_p2 }
   0x6   : > { %v421_v0 = vld [vmem:[%s504_s1] sm:$0xff] (!%p154_p3)   ;;  %v447_v1 = vmov (!%p154_p3), 0.0   ;;  %v422_v2 = vld [vmem:[%s504_s1 + $0x8] sm:$0xff] (!%p154_p3)   ;;  %vm448_vm0 = vmmov (!%p154_p3), 0   ;;  %p187_p4 = scmp.lt.s32.totalorder (!%p154_p3), %s437_s9, 1  ;;  %vm229_vm1 = vcmask (!%p154_p3), 261120  }
   0x7   : > { %157 = sbr.rel (%p154_p3) target bundleno = 235 (0xeb), region = 28  ;;  %387 = vmatprep.subr.bf16.mxu0 (!%p154_p3), %v447_v1  ;;  %391 = vmatprep.mubr.msk.bf16.mxu0 (!%p154_p3), %vm448_vm0, %v447_v1  ;;  %vm273_vm2 = vcmask (!%p154_p3), 523264  }
   0x8   : > { %388 = vmatpush3.bf16.msra.mxu0 (!%p154_p3), %v421_v0 }
   0x9   : > { %389 = vmatprep.subr.bf16.mxu0 (!%p154_p3), %v447_v1 }
   0xc   : > { %390 = vmatpush3.bf16.msra.mxu0 (!%p154_p3), %v422_v2 }
   0xe   : > { %s511_s9 = smov (!%p187_p4, %s437_s9), 1 }
   0xf   : > { %s377_s17 = sshll.u32 %s511_s9, 3 }
  0x10   : > { %s193_s20 = scalar_lea.vmem %s503_s0, %s377_s17  ;;  %s209_s23 = scalar_lea.vmem %s505_s2, %s377_s17 }
  0x11   : > { %v211_v3 = vld [vmem:[%s193_s20] sm:$0xff] }
  0x12   : > { %v212_v4 = vpack.c.bf16 %v211_v3, %v211_v3 }
  0x14   : > { %392 = vmatmul.mubr.msk.bf16.vlgmr.msra.gmra.mrb[0].mxu0 %vm229_vm1, %v212_v4 }
  0xe7   : > { %v267_v5 = vpop.f32.mrb[0].mxu0 }
  0xe8   : > { %274 = vst.msk [vmem:[%s209_s23] sm:$0xff] %vm273_vm2, %v267_v5  ;;  %v393_v6 = vpop.f32.mrb[1].mxu0 }
  0xe9   : > { %v270_v7 = vpop.f32.mrb[2].mxu0 }
  0xea   : > { %v394_v8 = vpop.f32.mrb[3].mxu0 }
  0xeb PF: > { %s12_s11 = sadd.s32 1, %s445_s11   ;;  %s506_s9 = smov %s441_s10 }
  0xec   : > { %p9_p5 = scmp.ge.s32.totalorder %s12_s11, 4   ;;  %s507_s10 = smov %s509_s12 }
  0xee   :  { %11 = sbr.rel (!%p9_p5) target bundleno = 2 (0x2), region = 61 }

// kernel: transformer_xl_forward.35
= control target key start
LH: loop header
LB: loop body
LE: loop exit
PB: predicated region body
PF: predicated region fallthrough
CT: control target
= control target key end

     0   :  { %s563_s12 = smov 0   ;;  %s565_s13 = smov 0   ;;  %s612_s0 = inlined_call_operand.vmem [shape: f32[16,32], index: 0, kind: input, shape index: {}]   ;;  %s613_s1 = inlined_call_operand.vmem [shape: bf16[32,64], index: 1, kind: input, shape index: {}]   ;;  %s614_s2 = inlined_call_operand.vmem [shape: f32[1,64], index: 2, kind: input, shape index: {}]   ;;  %s615_s3 = inlined_call_operand.vmem [shape: f32[16,64], index: 3, kind: output, shape index: {}]  }
   0x1   :  { %s567_s14 = smov 0  }
   0x2 LB: > { %s32_s15 = sadd.s32 1, %s534_s13  ;;  %p463_p0 = scmp.ge.s32.totalorder %s538_s14, 1  ;;  %s538_s14 = sphi %s567_s14, %s13_s14   ;;  %s534_s13 = sphi %s565_s13, %s617_s13   ;;  %s530_s12 = sphi %s563_s12, %s616_s12  }
   0x3   : > { %p34_p1 = scmp.ge.s32.totalorder %s32_s15, 2  ;;  %p186_p2 = scmp.lt.s32.totalorder %s538_s14, 3 }
   0x5   : > { %s619_s15 = smov (%p34_p1, %s32_s15), 0  ;;  %p187_p3 = pnand %p463_p0, %p186_p2 }
   0x6   : > { %v510_v0 = vld [vmem:[%s613_s1] sm:$0xff] (!%p187_p3)   ;;  %v540_v1 = vmov (!%p187_p3), 0.0   ;;  %v511_v2 = vld [vmem:[%s613_s1 + $0x8] sm:$0xff] (!%p187_p3)   ;;  %vm541_vm0 = vmmov (!%p187_p3), 0   ;;  %p225_p4 = scmp.lt.s32.totalorder (!%p187_p3), %s530_s12, 1  ;;  %vm277_vm1 = vcmask (!%p187_p3), 261120  }
   0x7   : > { %190 = sbr.rel (%p187_p3) target bundleno = 282 (0x11a), region = 32  ;;  %475 = vmatprep.subr.bf16.mxu0 (!%p187_p3), %v540_v1  ;;  %479 = vmatprep.mubr.msk.bf16.mxu0 (!%p187_p3), %vm541_vm0, %v540_v1  ;;  %v466_v5 = vld [vmem:[%s614_s2] ss:$0 sm:$0xff] (!%p187_p3)  ;;  %v542_v31 = vmov (!%p187_p3), -1.0   ;;  %vm347_vm3 = vcmask (!%p187_p3), 523264  }
   0x8   : > { %476 = vmatpush3.bf16.msra.mxu0 (!%p187_p3), %v510_v0 }
   0x9   : > { %477 = vmatprep.subr.bf16.mxu0 (!%p187_p3), %v540_v1 }
   0xc   : > { %478 = vmatpush3.bf16.msra.mxu0 (!%p187_p3), %v511_v2 }
   0xe   : > { %s621_s12 = smov (!%p225_p4, %s530_s12), 1 }
   0xf   : > { %s464_s20 = sshll.u32 %s621_s12, 3 }
  0x10   : > { %s231_s23 = scalar_lea.vmem %s612_s0, %s464_s20  ;;  %s250_s28 = scalar_lea.vmem %s615_s3, %s464_s20 }
  0x11   : > { %v252_v3 = vld [vmem:[%s231_s23] sm:$0xff] }
  0x12   : > { %v253_v4 = vpack.c.bf16 %v252_v3, %v252_v3 }
  0x14   : > { %480 = vmatmul.mubr.msk.bf16.vlgmr.msra.gmra.mrb[0].mxu0 %vm277_vm1, %v253_v4 }
  0xe7   : > { %v315_v6 = vpop.f32.mrb[0].mxu0 }
  0xe8   : > { %v316_v7 = vadd.f32 %v466_v5, %v315_v6  ;;  %v481_v8 = vpop.f32.mrb[1].mxu0 }
  0xe9   : > { %v318_v9 = vpop.f32.mrb[2].mxu0 }
  0xea   : > { %v322_v10 = vmul.f32 0.70710677, %v316_v7  ;;  %v482_v11 = vpop.f32.mrb[3].mxu0  ;;  %v321_v34 = vmul.f32 0.5, %v316_v7 }
  0xec   : > { %v325_v12 = vand.u32 2147483647, %v322_v10  ;;  %vm323_vm2 = vcmp.ge.f32.partialorder %v322_v10, 0.0 }
  0xed   : > { %v324_v32 = vsel %vm323_vm2, 1.0, %v542_v31 }
  0xee   : > { %v326_v13 = vmul.f32 0.3275911, %v325_v12  ;;  %v338_v15 = vsub.f32 0.0, %v325_v12 }
  0xf0   : > { %v327_v14 = vadd.f32 1.0, %v326_v13  ;;  %v339_v17 = vmul.f32 %v338_v15, %v325_v12 }
  0xf2   : > { %512 = vrcp.f32 %v327_v14  ;;  %v340_v20 = vmul.f32 1.442695, %v339_v17 }
  0xf4   : > { %514 = vpow2.f32 %v340_v20 }
  0xfc   : > { %v513_v16 = vpop.eup %512 }
  0xfd   : > { %v329_v18 = vmul.f32 1.0614054, %v513_v16 }
  0xfe   : > { %v515_v28 = vpop.eup %514 }
  0xff   : > { %v330_v19 = vadd.f32 -1.4531521, %v329_v18 }
 0x101   : > { %v331_v21 = vmul.f32 %v513_v16, %v330_v19 }
 0x103   : > { %v332_v22 = vadd.f32 1.4214138, %v331_v21 }
 0x105   : > { %v333_v23 = vmul.f32 %v513_v16, %v332_v22 }
 0x107   : > { %v334_v24 = vadd.f32 -0.28449672, %v333_v23 }
 0x109   : > { %v335_v25 = vmul.f32 %v513_v16, %v334_v24 }
 0x10b   : > { %v336_v26 = vadd.f32 0.2548296, %v335_v25 }
 0x10d   : > { %v337_v27 = vmul.f32 %v513_v16, %v336_v26 }
 0x10f   : > { %v342_v29 = vmul.f32 %v515_v28, %v337_v27 }
 0x111   : > { %v343_v30 = vsub.f32 1.0, %v342_v29 }
 0x113   : > { %v344_v33 = vmul.f32 %v343_v30, %v324_v32 }
 0x115   : > { %v345_v35 = vadd.f32 1.0, %v344_v33 }
 0x117   : > { %v346_v36 = vmul.f32 %v345_v35, %v321_v34 }
 0x119   : > { %348 = vst.msk [vmem:[%s250_s28] sm:$0xff] %vm347_vm3, %v346_v36 }
 0x11a PF: > { %s13_s14 = sadd.s32 1, %s538_s14   ;;  %s616_s12 = smov %s534_s13 }
 0x11b   : > { %p10_p5 = scmp.ge.s32.totalorder %s13_s14, 4   ;;  %s617_s13 = smov %s619_s15 }
 0x11d   :  { %12 = sbr.rel (!%p10_p5) target bundleno = 2 (0x2), region = 68 }

// kernel: transformer_xl_forward.36
= control target key start
LH: loop header
LB: loop body
LE: loop exit
PB: predicated region body
PF: predicated region fallthrough
CT: control target
= control target key end

     0   :  { %s635_s15 = smov 0   ;;  %s637_s16 = smov 0   ;;  %s686_s0 = inlined_call_operand.vmem [shape: f32[16,64], index: 0, kind: input, shape index: {}]   ;;  %s687_s1 = inlined_call_operand.vmem [shape: bf16[64,32], index: 1, kind: input, shape index: {}]   ;;  %s688_s2 = inlined_call_operand.vmem [shape: f32[1,32], index: 2, kind: input, shape index: {}]   ;;  %s689_s3 = inlined_call_operand.vmem [shape: f32[16,32], index: 3, kind: input, shape index: {}]   ;;  %s690_s4 = inlined_call_operand.vmem [shape: f32[16,32], index: 4, kind: output, shape index: {}]  }
   0x1   :  { %s639_s17 = smov 0  }
   0x2 LB: > { %s33_s18 = sadd.s32 1, %s602_s16  ;;  %p525_p0 = scmp.ge.s32.totalorder %s606_s17, 1  ;;  %s606_s17 = sphi %s639_s17, %s14_s17   ;;  %s602_s16 = sphi %s637_s16, %s692_s16   ;;  %s598_s15 = sphi %s635_s15, %s691_s15  }
   0x3   : > { %p35_p1 = scmp.ge.s32.totalorder %s33_s18, 2  ;;  %p225_p2 = scmp.lt.s32.totalorder %s606_s17, 3 }
   0x5   : > { %s694_s18 = smov (%p35_p1, %s33_s18), 0  ;;  %p226_p3 = pnand %p525_p0, %p225_p2 }
   0x6   : > { %v580_v0 = vld [vmem:[%s687_s1] sm:$0xff] (!%p226_p3)   ;;  %v608_v1 = vmov (!%p226_p3), 0.0   ;;  %v581_v2 = vld [vmem:[%s687_s1 + $0x8] sm:$0xff] (!%p226_p3)   ;;  %vm609_vm0 = vmmov (!%p226_p3), 0   ;;  %p273_p4 = scmp.lt.s32.totalorder (!%p226_p3), %s598_s15, 1  ;;  %v582_v3 = vld [vmem:[%s687_s1 + $0x10] sm:$0xff] (!%p226_p3)  }
   0x7   : > { %229 = sbr.rel (%p226_p3) target bundleno = 240 (0xf0), region = 36  ;;  %542 = vmatprep.subr.bf16.mxu0 (!%p226_p3), %v608_v1  ;;  %550 = vmatprep.mubr.msk.bf16.mxu0 (!%p226_p3), %vm609_vm0, %v608_v1  ;;  %v583_v4 = vld [vmem:[%s687_s1 + $0x18] sm:$0xff] (!%p226_p3)   ;;  %vm348_vm1 = vcmask (!%p226_p3), 523264   ;;  %v529_v7 = vld [vmem:[%s688_s2] ss:$0 sm:$0xff] (!%p226_p3)  ;;  %vm394_vm2 = vcmask (!%p226_p3), 261120  }
   0x8   : > { %543 = vmatpush3.bf16.msra.mxu0 (!%p226_p3), %v580_v0 }
   0x9   : > { %544 = vmatprep.subr.bf16.mxu0 (!%p226_p3), %v608_v1 }
   0xc   : > { %545 = vmatpush3.bf16.msra.mxu0 (!%p226_p3), %v581_v2 }
   0xd   : > { %546 = vmatprep.subr.bf16.mxu0 (!%p226_p3), %v608_v1 }
   0xe   : > { %s696_s15 = smov (!%p273_p4, %s598_s15), 1 }
   0xf   : > { %s526_s25 = sshll.u32 %s696_s15, 3 }
  0x10   : > { %s279_s28 = scalar_lea.vmem %s686_s0, %s526_s25  ;;  %547 = vmatpush3.bf16.msra.mxu0 %v582_v3  ;;  %s298_s7 = scalar_lea.vmem %s689_s3, %s526_s25 }
  0x11   : > { %v307_v5 = vld [vmem:[%s279_s28] sm:$0xff]  ;;  %548 = vmatprep.subr.bf16.mxu0 %v608_v1  ;;  %s305_s12 = scalar_lea.vmem %s690_s4, %s526_s25 }
  0x12   : > { %v308_v6 = vpack.c.bf16 %v307_v5, %v307_v5  ;;  %v392_v9 = vld [vmem:[%s298_s7] sm:$0xff] }
  0x14   : > { %549 = vmatpush3.bf16.msra.mxu0 %v583_v4 }
  0x17   : > { %551 = vmatmul.mubr.msk.bf16.vlgmr.msra.gmra.mrb[0].mxu0 %vm348_vm1, %v308_v6 }
  0xea   : > { %v386_v8 = vpop.f32.mrb[0].mxu0 }
  0xeb   : > { %v387_v10 = vadd.f32 %v529_v7, %v386_v8  ;;  %v552_v11 = vpop.f32.mrb[1].mxu0 }
  0xec   : > { %v389_v12 = vpop.f32.mrb[2].mxu0 }
  0xed   : > { %v393_v13 = vadd.f32 %v392_v9, %v387_v10  ;;  %v553_v14 = vpop.f32.mrb[3].mxu0 }
  0xef   : > { %395 = vst.msk [vmem:[%s305_s12] sm:$0xff] %vm394_vm2, %v393_v13 }
  0xf0 PF: > { %s14_s17 = sadd.s32 1, %s606_s17   ;;  %s691_s15 = smov %s602_s16 }
  0xf1   : > { %p11_p5 = scmp.ge.s32.totalorder %s14_s17, 4   ;;  %s692_s16 = smov %s694_s18 }
  0xf3   :  { %13 = sbr.rel (!%p11_p5) target bundleno = 2 (0x2), region = 75 }

// kernel: transformer_xl_forward.32
= control target key start
LH: loop header
LB: loop body
LE: loop exit
PB: predicated region body
PF: predicated region fallthrough
CT: control target
= control target key end

     0   :  { %s568_s9 = smov 0   ;;  %s622_s0 = inlined_call_operand.vmem [shape: f32[2,8,32], index: 0, kind: input, shape index: {}]   ;;  %s623_s1 = inlined_call_operand.vmem [shape: f32[2,8,64], index: 1, kind: input, shape index: {}]   ;;  %s624_s2 = inlined_call_operand.vmem [shape: f32[2,8,32], index: 2, kind: output, shape index: {}]  }
   0x1 LB: > { %s471_s10 = sadd.s32 4294967295, %s545_s9   ;;  %p475_p0 = scmp.ge.s32.totalorder %s545_s9, 1  ;;  %s545_s9 = sphi %s568_s9, %s12_s9  }
   0x2   : > { %p120_p1 = scmp.lt.s32.totalorder %s545_s9, 3 }
   0x4   : > { %p121_p2 = pnand %p475_p0, %p120_p1 }
   0x5   : > { %p144_p3 = scmp.lt.s32.totalorder (!%p121_p2), %s471_s10, 1  ;;  %v547_v0 = vmov (!%p121_p2), 0.0   ;;  %vm548_vm0 = vmmov (!%p121_p2), 0   ;;  %vm162_vm1 = vcmask (!%p121_p2), 130048   ;;  %s549_s18 = smov (!%p121_p2), 96   ;;  %vm236_vm2 = vcmask (!%p121_p2), 1043456  }
   0x6   : > { %124 = sbr.rel (%p121_p2) target bundleno = 899 (0x383), region = 28  ;;  %493 = vmatprep.subr.bf16.mxu0 (!%p121_p2), %v547_v0  ;;  %495 = vmatprep.mubr.msk.bf16.mxu0 (!%p121_p2), %vm548_vm0, %v547_v0  ;;  %s550_s19 = smov (!%p121_p2), 112   ;;  %vm209_vm3 = vcmask (!%p121_p2), 64512   ;;  %vm404_vm4 = vcmask (!%p121_p2), 261248  }
   0x7   : > { %499 = vmatprep.subr.bf16.mxu1 (!%p121_p2), %v547_v0  ;;  %501 = vmatprep.mubr.msk.bf16.mxu1 (!%p121_p2), %vm548_vm0, %v547_v0  ;;  %s551_s20 = smov (!%p121_p2), 80   ;;  %s552_s24 = smov (!%p121_p2), 16  }
   0xd   : > { %s626_s10 = smov (!%p144_p3, %s471_s10), 1 }
   0xe   : > { %s582_s11 = sshll.u32 %s626_s10, 3 }
   0xf   : > { %s151_s14 = scalar_lea.vmem %s623_s1, %s582_s11  ;;  %s147_s17 = scalar_lea.vmem %s622_s0, %s582_s11 }
  0x10   : > { %v160_v1 = vld [vmem:[%s151_s14] sm:$0xff]  ;;  %s611_s23 = scalar_lea.vmem %s624_s2, %s582_s11 }
  0x11   : > { %v157_v2 = vld [vmem:[%s147_s17] sm:$0xff]  ;;  %v161_v3 = vpack.c.bf16 %v160_v1, %v160_v1 }
  0x12   : > { %v158_v4 = vmul.f32 0.25, %v157_v2 }
  0x13   : > { %v167_v5 = vsel %vm162_vm1, %v161_v3, 0  ;;  %231 = vrot.lane.b32.xlu0 %v161_v3, %s549_s18 }
  0x14   : > { %v159_v6 = vpack.c.bf16 %v158_v4, %v158_v4  ;;  %494 = vmatpush3.bf16.xpose.msra.mxu0 %v167_v5 }
  0x15   : > { %511 = vmatprep.subr.bf16.mxu0 %v547_v0 }
  0x16   : > { %282 = vrot.lane.b32.xlu1 %v159_v6, %s550_s19 }
  0x17   : > { %284 = vrot.lane.b32.xlu0 %v161_v3, %s550_s19 }
  0x1a   : > { %352 = vrot.lane.b32.xlu1 %v161_v3, %s551_s20 }
  0x1b   : > { %496 = vmatmul.mubr.msk.bf16.vlgmr.msra.gmra.mrb[0].mxu0 %vm162_vm1, %v159_v6 }
  0x1c   : > { %513 = vmatprep.mubr.msk.bf16.mxu0 %vm548_vm0, %v547_v0 }
  0x85   : > { %v232_v7 = vpop.permute.xlu0 %231 }
  0x86   : > { %v238_v8 = vsel %vm236_vm2, %v232_v7, 0 }
  0x87   : > { %500 = vmatpush3.bf16.msra.mxu1 %v238_v8 }
  0x88   : > { %505 = vmatprep.subr.bf16.mxu1 %v547_v0  ;;  %v283_v35 = vpop.permute.xlu1 %282 }
  0x89   : > { %v285_v31 = vpop.permute.xlu0 %284 }
  0x8a   : > { %v290_v33 = vsel %vm162_vm1, %v285_v31, 0 }
  0x8c   : > { %v353_v36 = vpop.permute.xlu1 %352 }
  0x8d   : > { %v358_v37 = vsel %vm236_vm2, %v353_v36, 0 }
  0x8e   : > { %512 = vmatpush3.bf16.msra.mxu0 %v358_v37 }
  0xee   : > { %v203_v9 = vpop.f32.mrb[0].mxu0 }
  0xef   : > { %v210_v10 = vsel %vm209_vm3, %v203_v9, -inf  ;;  %v497_v11 = vpop.f32.mrb[1].mxu0 }
  0xf0   : > { %v211_v12 = vrot.slane %v210_v10, 4  ;;  %v206_v13 = vpop.f32.mrb[2].mxu0 }
  0xf1   : > { %v498_v14 = vpop.f32.mrb[3].mxu0 }
  0xf2   : > { %v212_v15 = vmax.f32 %v210_v10, %v211_v12 }
  0xf4   : > { %v213_v16 = vrot.slane %v212_v15, 2 }
  0xf6   : > { %v214_v17 = vmax.f32 %v212_v15, %v213_v16 }
  0xf8   : > { %v215_v18 = vrot.slane %v214_v17, 1 }
  0xfa   : > { %v216_v19 = vmax.f32 %v214_v17, %v215_v18 }
  0xfc   : > { %v217_v20 = vsub.f32 %v203_v9, %v216_v19 }
  0xfe   : > { %v218_v21 = vmul.f32 1.442695, %v217_v20 }
 0x100   : > { %531 = vpow2.f32 %v218_v21 }
 0x10a   : > { %v532_v22 = vpop.eup %531 }
 0x10b   : > { %v220_v23 = vsel %vm209_vm3, %v532_v22, 0.0 }
 0x10c   : > { %v221_v24 = vrot.slane %v220_v23, 4 }
 0x10e   : > { %v222_v25 = vadd.f32 %v221_v24, %v220_v23 }
 0x110   : > { %v223_v26 = vrot.slane %v222_v25, 2 }
 0x112   : > { %v224_v27 = vadd.f32 %v223_v26, %v222_v25 }
 0x114   : > { %v225_v28 = vrot.slane %v224_v27, 1 }
 0x116   : > { %v226_v29 = vadd.f32 %v225_v28, %v224_v27 }
 0x118   : > { %533 = vrcp.f32 %v226_v29 }
 0x122   : > { %v534_v30 = vpop.eup %533 }
 0x123   : > { %v228_v32 = vmul.f32 %v534_v30, %v532_v22 }
 0x125   : > { %v229_v34 = vpack.c.bf16 %v228_v32, %v228_v32 }
 0x127   : > { %502 = vmatmul.mubr.msk.bf16.vlgmr.msra.gmra.mrb[0].mxu1 %vm209_vm3, %v229_v34 }
 0x128   : > { %506 = vmatpush3.bf16.xpose.msra.mxu1 %v290_v33  ;;  %507 = vmatprep.mubr.msk.bf16.mxu1 %vm548_vm0, %v547_v0 }
 0x12f   : > { %508 = vmatmul.mubr.msk.bf16.vlgmr.msra.gmra.mrb[4].mxu1 %vm162_vm1, %v283_v35 }
 0x1fa   : > { %v274_v38 = vpop.f32.mrb[0].mxu1 }
 0x1fb   : > { %280 = vst.msk [vmem:[%s611_s23] sm:$0xff] %vm162_vm1, %v274_v38  ;;  %v503_v39 = vpop.f32.mrb[1].mxu1 }
 0x1fc   : > { %v277_v40 = vpop.f32.mrb[2].mxu1 }
 0x1fd   : > { %v504_v41 = vpop.f32.mrb[3].mxu1 }
 0x202   : > { %v326_v42 = vpop.f32.mrb[4].mxu1 }
 0x203   : > { %v332_v43 = vsel %vm209_vm3, %v326_v42, -inf  ;;  %v509_v44 = vpop.f32.mrb[5].mxu1 }
 0x204   : > { %v333_v45 = vrot.slane %v332_v43, 4  ;;  %v329_v46 = vpop.f32.mrb[6].mxu1 }
 0x205   : > { %v510_v47 = vpop.f32.mrb[7].mxu1 }
 0x206   : > { %v334_v48 = vmax.f32 %v332_v43, %v333_v45 }
 0x208   : > { %v335_v49 = vrot.slane %v334_v48, 2 }
 0x20a   : > { %v336_v50 = vmax.f32 %v334_v48, %v335_v49 }
 0x20c   : > { %v337_v51 = vrot.slane %v336_v50, 1 }
 0x20e   : > { %v338_v52 = vmax.f32 %v336_v50, %v337_v51 }
 0x210   : > { %v339_v53 = vsub.f32 %v326_v42, %v338_v52 }
 0x212   : > { %v340_v54 = vmul.f32 1.442695, %v339_v53 }
 0x214   : > { %535 = vpow2.f32 %v340_v54 }
 0x21e   : > { %v536_v55 = vpop.eup %535 }
 0x21f   : > { %v342_v56 = vsel %vm209_vm3, %v536_v55, 0.0 }
 0x220   : > { %v343_v57 = vrot.slane %v342_v56, 4 }
 0x222   : > { %v344_v58 = vadd.f32 %v343_v57, %v342_v56 }
 0x224   : > { %v345_v59 = vrot.slane %v344_v58, 2 }
 0x226   : > { %v346_v60 = vadd.f32 %v345_v59, %v344_v58 }
 0x228   : > { %v347_v61 = vrot.slane %v346_v60, 1 }
 0x22a   : > { %v348_v62 = vadd.f32 %v347_v61, %v346_v60 }
 0x22c   : > { %537 = vrcp.f32 %v348_v62 }
 0x236   : > { %v538_v63 = vpop.eup %537 }
 0x237   : > { %v350_v0 = vmul.f32 %v538_v63, %v536_v55 }
 0x239   : > { %v351_v1 = vpack.c.bf16 %v350_v0, %v350_v0 }
 0x23b   : > { %514 = vmatmul.mubr.msk.bf16.vlgmr.msra.gmra.mrb[4].mxu0 %vm209_vm3, %v351_v1 }
 0x30e   : > { %v394_v2 = vpop.f32.mrb[4].mxu0 }
 0x30f   : > { %401 = vrot.lane.b32.xlu0 %v394_v2, %s552_s24  ;;  %v515_v3 = vpop.f32.mrb[5].mxu0 }
 0x310   : > { %v397_v4 = vpop.f32.mrb[6].mxu0 }
 0x311   : > { %v516_v5 = vpop.f32.mrb[7].mxu0 }
 0x381   : > { %v402_v6 = vpop.permute.xlu0 %401 }
 0x382   : > { %405 = vst.msk [vmem:[%s611_s23] sm:$0xff] %vm404_vm4, %v402_v6 }
 0x383 PF: > { %s12_s9 = sadd.s32 1, %s545_s9  }
 0x384   : > { %p9_p4 = scmp.ge.s32.totalorder %s12_s9, 4  }
 0x386   :  { %11 = sbr.rel (!%p9_p4) target bundleno = 1 (0x1), region = 61 }

// kernel: transformer_xl_forward.49
= control target key start
LH: loop header
LB: loop body
LE: loop exit
PB: predicated region body
PF: predicated region fallthrough
CT: control target
= control target key end

     0   :  { %v144_v1 = vmov 0.0   ;;  %vm145_vm0 = vmmov 0   ;;  %s191_s0 = inlined_call_operand.vmem [shape: f32[2,32], index: 0, kind: input, shape index: {}]   ;;  %s192_s1 = inlined_call_operand.vmem [shape: bf16[32,128], index: 1, kind: input, shape index: {}]   ;;  %s193_s2 = inlined_call_operand.vmem [shape: f32[1,128], index: 2, kind: input, shape index: {}]   ;;  %s194_s3 = inlined_call_operand.hbm [shape: f32[2,128], index: 3, kind: output, shape index: {}]  }
   0x1   :  { %v118_v0 = vld [vmem:[%s192_s1] sm:$0xff]   ;;  %107 = vmatprep.subr.bf16.mxu0 %v144_v1  ;;  %v119_v2 = vld [vmem:[%s192_s1 + $0x8] sm:$0xff]   ;;  %111 = vmatprep.mubr.msk.bf16.mxu0 %vm145_vm0, %v144_v1 }
   0x2   :  { %108 = vmatpush3.bf16.msra.mxu0 %v118_v0  ;;  %v16_v3 = vld [vmem:[%s191_s0] sm:$0x3] }
   0x3   :  { %109 = vmatprep.subr.bf16.mxu0 %v144_v1 }
   0x4   :  { %8 = vsyncpa [#allocation4], 0  ;;  %v17_v4 = vpack.c.bf16 %v16_v3, %v16_v3  ;;  %vm41_vm1 = vcmask 261120   ;;  %v100_v5 = vld [vmem:[%s193_s2] ss:$0 sm:$0xff]  ;;  %s146_s20 = smov [#allocation3]  }
   0x5   :  { %s92_s21 = sshll.u32 %s146_s20, 4  ;;  %s93_s21 = int_to_ptr.vmem [resolvable:$true] %s92_s21 }
   0x6   :  { %110 = vmatpush3.bf16.msra.mxu0 %v119_v2  ;;  %s120_s0 = scalar_lea.vmem %s93_s21, 32  ;;  %p125_p1 = scmp.lt.s32.totalorder %s93_s21, %s93_s21 }
   0x7   :  { %p121_p0 = scmp.ne.s32.totalorder %s93_s21, %s120_s0  ;;  %p126_p2 = scmp.lt.s32.totalorder %s120_s0, %s120_s0 }
   0x9   :  { %112 = vmatmul.mubr.msk.bf16.vlgmr.msra.gmra.mrb[0].mxu0 %vm41_vm1, %v17_v4  ;;  %p127_p3 = por %p126_p2, %p125_p1 }
   0xb   :  { %p128_p4 = pnand %p127_p3, %p121_p0 }
  0xdc   :  { %v79_v6 = vpop.f32.mrb[0].mxu0 }
  0xdd   :  { %v80_v7 = vadd.f32 %v100_v5, %v79_v6  ;;  %v113_v8 = vpop.f32.mrb[1].mxu0 }
  0xde   :  { %v82_v9 = vpop.f32.mrb[2].mxu0 }
  0xdf   :  { %85 = vst [vmem:[#allocation3] sm:$0x3] %v80_v7  ;;  %v114_v10 = vpop.f32.mrb[3].mxu0 }
  0xe0   :  { %131 = shalt.err (!%p128_p4)
}
  0xe1   :  { %s132_s2 = scalar_lea.hbm %s194_s3, 32 }
  0xe2   :  { %p133_p5 = scmp.ne.s32.totalorder %s194_s3, %s132_s2  ;;  %p136_p6 = scmp.lt.u32.totalorder %s132_s2, %s194_s3 }
  0xe4   :  { %p138_p7 = pnand %p136_p6, %p133_p5 }
  0xe6   :  { %141 = shalt.err (!%p138_p7)
}
  0xe7   :  { %95 = dma.vmem_to_hbm [thread:$0]  %s93_s21, 32, %s194_s3, [#allocation4]  }
  0xe8   :  { %142 = dma.done.wait [#allocation4], 32  }
  0xe9   :  { %143 = vsyncadd [#allocation4], 4294967264 }
  0xea   :  { %99 = vsyncpa [#allocation4], 1 }

</bundles_post_ra>
